<compile_context>
chip_gen: v7x
topology: tpu7x:2x2x1
jax: 0.10.0
libtpu: 0.0.40
codegen_flags: <defaults>
</compile_context>

<pallas_src>
import functools
import math

import jax
import jax.numpy as jnp
from jax import lax
from jax.experimental import pallas as pl
from jax.experimental.pallas import tpu as pltpu

OUT_NODES = {"BP": 215, "MF": 131, "CC": 50}

# Static network dims (cfg07: Conv1d(357->128,k2,s2,p2), M, Conv1d(128->64,k2,s2,p2), M2)
N_TOK = 357          # sentence length == Conv1 in_channels (PyTorch dim-1 is channels)
EMB = 128            # embedding dim == Conv1 spatial length
C1 = 128             # conv1 out channels
C2 = 64              # conv2 out channels
K1 = 2 * N_TOK       # conv1 im2col patch (k-major)                 = 714
K1P = 768            # lane-padded patch (multiple of 128)
K2 = 2 * C1          # conv2 im2col patch                           = 256
HID = 512            # FC1 width
FLAT = C2 * 17       # 1088


# ----------------------------------------------------------------------------
# Fused Pallas kernel (one batch tile of TB samples per grid step)
# ----------------------------------------------------------------------------
def domain_kernel(x_ref, w1_ref, b1_ref, w2_ref, b2_ref,
                  wfc1_ref, bfc1_ref, wfc2_ref, bfc2_ref,
                  o_ref, y1s, *, TB):
    """conv1+pool1 -> conv2+pool2 -> FC1+ReLU -> FC2+sigmoid, all in VMEM.

    x_ref rows are glue-ordered as  row = r*(17*TB) + q*TB + b  with conv1 output
    position p = 4*q + r (r in 0..3, q in 0..16; p = 66, 67 are zero-pad junk that only
    ever lands in the discarded tail of the odd-pool residue blocks).
    """
    n1 = 17 * TB

    # ---- conv1: ONE matmul over all residue blocks & the whole tile, bias + ReLU ----
    y1 = jnp.dot(x_ref[...], w1_ref[...], preferred_element_type=jnp.float32)
    y1s[...] = jnp.maximum(y1 + b1_ref[...], 0.0).astype(jnp.bfloat16)       # (4*17TB, C1)

    # ---- maxpool1 (k=2, s=2): pair residue blocks (0,1) and (2,3) ----
    p1_even = jnp.maximum(y1s[pl.ds(0, n1), :], y1s[pl.ds(n1, n1), :])       # pool1[:, 2q]
    p1_odd = jnp.concatenate(                                                # pool1[:, 2q+1]
        [jnp.maximum(y1s[pl.ds(2 * n1, n1 - TB), :],
                     y1s[pl.ds(3 * n1, n1 - TB), :]),
         jnp.zeros((TB, C1), jnp.bfloat16)],                                 # conv2 right pad
        axis=0)

    # ---- conv2: single matmul on lane-concatenated (k-major) patches + bias + ReLU ----
    xcol2 = jnp.concatenate([p1_even, p1_odd], axis=-1)                      # (17TB, 256) bf16
    y2 = jnp.dot(xcol2, w2_ref[...], preferred_element_type=jnp.float32)
    y2 = jnp.maximum(y2 + b2_ref[...], 0.0).astype(jnp.bfloat16)             # conv2 pos 1..17

    # ---- maxpool2 (k=2, s=1): one shifted block max; conv2 pos 0 sees only padding ----
    relu_b2 = jnp.maximum(b2_ref[...], 0.0).astype(jnp.bfloat16)             # (1, C2)
    p2_0 = jnp.maximum(relu_b2, y2[0:TB])                                    # pool2 pos 0
    p2_rest = jnp.maximum(y2[0:16 * TB], y2[TB:17 * TB])                     # pool2 pos 1..16

    # ---- flatten folded into FC1 weight layout: lane-concat 17 slabs, one K=1088 dot ----
    pieces = [p2_0] + [p2_rest[i * TB:(i + 1) * TB] for i in range(16)]
    xfc1 = jnp.concatenate(pieces, axis=-1)                                  # (TB, 1088) bf16
    h = jnp.maximum(
        jnp.dot(xfc1, wfc1_ref[...], preferred_element_type=jnp.float32) + bfc1_ref[...],
        0.0)

    # TODO(synk): F.dropout(p=0.3) around this ReLU would need in-kernel PRNG for
    #             training mode; it is the identity here (inference / eval).
    logits = jnp.dot(h.astype(jnp.bfloat16), wfc2_ref[...],
                     preferred_element_type=jnp.float32) + bfc2_ref[...]
    o_ref[...] = jax.nn.sigmoid(logits)                                      # lane-padded out


# ----------------------------------------------------------------------------
# Forward (glue: embedding gather + reshape-only im2col, then one gridded pallas_call)
# ----------------------------------------------------------------------------
def domain_module_forward(tokens, kp, *, batch_tile=None):
    B = tokens.shape[0]
    n_out = kp["n_out"]
    n_out_pad = kp["wfc2_t"].shape[1]

    TB = batch_tile or (B if B <= 16 else 16)       # tile kept v7x-VMEM friendly
    Bp = ((B + TB - 1) // TB) * TB
    G = Bp // TB
    rows_blk = 4 * 17 * TB

    # --- embedding gather + bf16 im2col (reshapes/transposes only, no gather) ---
    emb = jnp.take(kp["emb"], tokens, axis=0)                    # (B, 357, 128) f32
    x1 = jnp.transpose(emb, (0, 2, 1)).astype(jnp.bfloat16)      # (B, 128, 357) length-major
    if Bp != B:
        x1 = jnp.pad(x1, ((0, Bp - B), (0, 0), (0, 0)))
    x1p = jnp.pad(x1, ((0, 0), (2, 6), (0, 0)))                  # pad=2 left, right to 4-grid
    xcol = x1p.reshape(Bp, 68, K1).reshape(Bp, 17, 4, K1)        # p = 4*q + r, k-major patch
    xcol = xcol.reshape(G, TB, 17, 4, K1)
    xcol = jnp.transpose(xcol, (0, 3, 2, 1, 4))                  # (G, 4, 17, TB, K1)
    xcol = xcol.reshape(G * rows_blk, K1)                        # contiguous per-tile rows
    xcol = jnp.pad(xcol, ((0, 0), (0, K1P - K1)))                # lanes 714 -> 768

    const = lambda g: (0, 0)                                     # weights stay VMEM-resident
    out = pl.pallas_call(
        functools.partial(domain_kernel, TB=TB),
        grid=(G,),
        in_specs=[
            pl.BlockSpec((rows_blk, K1P), lambda g: (g, 0)),
            pl.BlockSpec((K1P, C1), const),
            pl.BlockSpec((1, C1), const),
            pl.BlockSpec((K2, C2), const),
            pl.BlockSpec((1, C2), const),
            pl.BlockSpec((FLAT, HID), const),
            pl.BlockSpec((1, HID), const),
            pl.BlockSpec((HID, n_out_pad), const),
            pl.BlockSpec((1, n_out_pad), const),
        ],
        out_specs=pl.BlockSpec((TB, n_out_pad), lambda g: (g, 0)),
        out_shape=jax.ShapeDtypeStruct((Bp, n_out_pad), jnp.float32),
        scratch_shapes=[pltpu.VMEM((rows_blk, C1), jnp.bfloat16)],   # conv1+ReLU (bf16)
        compiler_params=pltpu.CompilerParams(
            dimension_semantics=("parallel",),
            vmem_limit_bytes=32 * 1024 * 1024),
    )(xcol, kp["w1_col"], kp["b1"], kp["w2_col"], kp["b2"],
      kp["wfc1_flat"], kp["bfc1"], kp["wfc2_t"], kp["bfc2"])
    return out[:B, :n_out]


# ----------------------------------------------------------------------------
# Deterministic synthetic parameters (shapes per Domain_Module.__init__)
# ----------------------------------------------------------------------------
def init_params(func="CC"):
    n_out = OUT_NODES[func]
    n_out_pad = ((n_out + 127) // 128) * 128
    keys = jax.random.split(jax.random.PRNGKey(0), 9)

    emb = jax.random.normal(keys[0], (2984, EMB), jnp.float32) * 0.1
    emb = emb.at[0].set(0.0)                                # padding_idx=0

    w1 = jax.random.normal(keys[1], (C1, N_TOK, 2), jnp.float32) / math.sqrt(N_TOK * 2)
    b1 = jax.random.normal(keys[2], (C1,), jnp.float32) * 0.01
    w2 = jax.random.normal(keys[3], (C2, C1, 2), jnp.float32) / math.sqrt(C1 * 2)
    b2 = jax.random.normal(keys[4], (C2,), jnp.float32) * 0.01
    wfc1 = jax.random.normal(keys[5], (HID, FLAT), jnp.float32) / math.sqrt(FLAT)
    bfc1 = jax.random.normal(keys[6], (HID,), jnp.float32) * 0.01
    wfc2 = jax.random.normal(keys[7], (n_out, HID), jnp.float32) / math.sqrt(HID)
    bfc2 = jax.random.normal(keys[8], (n_out,), jnp.float32) * 0.01

    raw = dict(emb=emb, w1=w1, b1=b1, w2=w2, b2=b2,
               wfc1=wfc1, bfc1=bfc1, wfc2=wfc2, bfc2=bfc2)

    # Kernel-ready layouts: k-major conv weights, flatten folded into FC1 (row = p*64+c),
    # lane-padded FC2, bf16 MXU operands.
    w1_col = jnp.transpose(w1, (2, 1, 0)).reshape(K1, C1)                    # (714, 128)
    w1_col = jnp.pad(w1_col, ((0, K1P - K1), (0, 0))).astype(jnp.bfloat16)
    w2_col = jnp.transpose(w2, (2, 1, 0)).reshape(K2, C2).astype(jnp.bfloat16)
    wfc1_flat = jnp.transpose(wfc1.reshape(HID, C2, 17), (2, 1, 0))          # (17, 64, 512)
    wfc1_flat = wfc1_flat.reshape(FLAT, HID).astype(jnp.bfloat16)            # (1088, 512)
    wfc2_t = jnp.pad(wfc2.T, ((0, 0), (0, n_out_pad - n_out))).astype(jnp.bfloat16)
    bfc2_p = jnp.pad(bfc2.reshape(1, n_out), ((0, 0), (0, n_out_pad - n_out)))

    kparams = dict(
        emb=emb, n_out=n_out,
        w1_col=w1_col, b1=b1.reshape(1, C1),
        w2_col=w2_col, b2=b2.reshape(1, C2),
        wfc1_flat=wfc1_flat, bfc1=bfc1.reshape(1, HID),
        wfc2_t=wfc2_t, bfc2=bfc2_p,
    )
    return raw, kparams


# ----------------------------------------------------------------------------
# Pure-XLA f32 reference (follows the PyTorch module op-for-op) for validation
# ----------------------------------------------------------------------------
def reference_forward(tokens, raw):
    emb = jnp.take(raw["emb"], tokens, axis=0)              # (B, 357, 128) == NCL
    y = lax.conv_general_dilated(emb, raw["w1"], window_strides=(2,), padding=[(2, 2)],
                                 dimension_numbers=("NCH", "OIH", "NCH"))
    y = jax.nn.relu(y + raw["b1"][None, :, None])           # (B, 128, 66)
    y = lax.reduce_window(y, -jnp.inf, lax.max, (1, 1, 2), (1, 1, 2), "VALID")  # (B,128,33)
    y = lax.conv_general_dilated(y, raw["w2"], (2,), [(2, 2)],
                                 dimension_numbers=("NCH", "OIH", "NCH"))
    y = jax.nn.relu(y + raw["b2"][None, :, None])           # (B, 64, 18)
    y = lax.reduce_window(y, -jnp.inf, lax.max, (1, 1, 2), (1, 1, 1), "VALID")  # (B,64,17)
    flat = y.reshape(y.shape[0], -1)                        # channel-major flatten (B, 1088)
    h = jax.nn.relu(flat @ raw["wfc1"].T + raw["bfc1"])     # dropout == identity (eval)
    return jax.nn.sigmoid(h @ raw["wfc2"].T + raw["bfc2"])


if __name__ == "__main__":
    func = "CC"                       # 50 output nodes
    B = 2
    raw, kp = init_params(func)

    # domainSentence: (B, 357) int token ids in [0, 2984) with trailing padding zeros.
    key = jax.random.PRNGKey(0)
    tokens = jax.random.randint(key, (B, N_TOK), 0, 2984, dtype=jnp.int32)
    tokens = tokens.at[:, 300:].set(0)

    fwd = jax.jit(lambda t: domain_module_forward(t, kp))
    out = jax.block_until_ready(fwd(tokens))

    assert out.shape == (B, OUT_NODES[func]), out.shape
    assert bool(jnp.all(jnp.isfinite(out)))
    assert bool(jnp.all((out >= 0.0) & (out <= 1.0)))

    ref = jax.block_until_ready(jax.jit(lambda t: reference_forward(t, raw))(tokens))
    err = float(jnp.max(jnp.abs(out - ref)))
    assert err < 2e-2, err

    print("KERNEL_OK")
</pallas_src>

<mosaic_0001>
module attributes {stable_mosaic.version = 11 : i64} {
  func.func @domain_kernel(%arg0: i32, %arg1: memref<136x768xbf16, #tpu.memory_space<vmem>>, %arg2: memref<768x128xbf16, #tpu.memory_space<vmem>>, %arg3: memref<1x128xf32, #tpu.memory_space<vmem>>, %arg4: memref<256x64xbf16, #tpu.memory_space<vmem>>, %arg5: memref<1x64xf32, #tpu.memory_space<vmem>>, %arg6: memref<1088x512xbf16, #tpu.memory_space<vmem>>, %arg7: memref<1x512xf32, #tpu.memory_space<vmem>>, %arg8: memref<512x128xbf16, #tpu.memory_space<vmem>>, %arg9: memref<1x128xf32, #tpu.memory_space<vmem>>, %arg10: memref<2x128xf32, #tpu.memory_space<vmem>>, %arg11: memref<136x128xbf16, #tpu.memory_space<vmem>>) attributes {dimension_semantics = [#tpu.dimension_semantics<parallel>], iteration_bounds = array<i64: 1>, scalar_prefetch = 0 : i64, scratch_operands = 1 : i64, tpu.core_type = #tpu.core_type<tc>, window_params = [{transform_indices = @transform_0, window_bounds = array<i64: 136, 768>}, {pipeline_mode = #tpu.pipeline_mode<synchronous>, transform_indices = @transform_1, window_bounds = array<i64: 768, 128>}, {pipeline_mode = #tpu.pipeline_mode<synchronous>, transform_indices = @transform_2, window_bounds = array<i64: 1, 128>}, {pipeline_mode = #tpu.pipeline_mode<synchronous>, transform_indices = @transform_3, window_bounds = array<i64: 256, 64>}, {pipeline_mode = #tpu.pipeline_mode<synchronous>, transform_indices = @transform_4, window_bounds = array<i64: 1, 64>}, {pipeline_mode = #tpu.pipeline_mode<synchronous>, transform_indices = @transform_5, window_bounds = array<i64: 1088, 512>}, {pipeline_mode = #tpu.pipeline_mode<synchronous>, transform_indices = @transform_6, window_bounds = array<i64: 1, 512>}, {pipeline_mode = #tpu.pipeline_mode<synchronous>, transform_indices = @transform_7, window_bounds = array<i64: 512, 128>}, {pipeline_mode = #tpu.pipeline_mode<synchronous>, transform_indices = @transform_8, window_bounds = array<i64: 1, 128>}, {transform_indices = @transform_9, window_bounds = array<i64: 2, 128>}]} {
    %c0 = arith.constant 0 : index
    %c0_0 = arith.constant 0 : index
    %0 = vector.load %arg1[%c0, %c0_0] : memref<136x768xbf16, #tpu.memory_space<vmem>>, vector<136x768xbf16>
    %c0_1 = arith.constant 0 : index
    %c0_2 = arith.constant 0 : index
    %1 = vector.load %arg2[%c0_1, %c0_2] : memref<768x128xbf16, #tpu.memory_space<vmem>>, vector<768x128xbf16>
    %cst = arith.constant dense<0.000000e+00> : vector<136x128xf32>
    %2 = tpu.matmul %0, %1, %cst {dimension_numbers = #tpu.dot_dimension_numbers<[1], [0], [0], [1], [0, 0, 1, 1], [], []>} : vector<136x768xbf16>, vector<768x128xbf16>, vector<136x128xf32> -> vector<136x128xf32>
    %c0_3 = arith.constant 0 : index
    %c0_4 = arith.constant 0 : index
    %3 = vector.load %arg3[%c0_3, %c0_4] : memref<1x128xf32, #tpu.memory_space<vmem>>, vector<1x128xf32>
    %4 = vector.broadcast %3 : vector<1x128xf32> to vector<136x128xf32>
    %5 = arith.addf %2, %4 : vector<136x128xf32>
    %cst_5 = arith.constant 0.000000e+00 : f32
    %6 = vector.broadcast %cst_5 : f32 to vector<136x128xf32>
    %7 = arith.maximumf %5, %6 : vector<136x128xf32>
    %8 = arith.truncf %7 : vector<136x128xf32> to vector<136x128xbf16>
    %c0_6 = arith.constant 0 : index
    %c0_7 = arith.constant 0 : index
    %9 = vector.load %arg11[%c0_6, %c0_7] : memref<136x128xbf16, #tpu.memory_space<vmem>>, vector<136x128xbf16>
    tpu.vector_store %arg11[%c0_6, %c0_7], %8 {strides = array<i32>} : memref<136x128xbf16, #tpu.memory_space<vmem>>, vector<136x128xbf16>,
    %c0_8 = arith.constant 0 : index
    %c0_9 = arith.constant 0 : index
    %10 = vector.load %arg11[%c0_8, %c0_9] : memref<136x128xbf16, #tpu.memory_space<vmem>>, vector<34x128xbf16>
    %c34 = arith.constant 34 : index
    %c0_10 = arith.constant 0 : index
    %11 = vector.load %arg11[%c34, %c0_10] : memref<136x128xbf16, #tpu.memory_space<vmem>>, vector<34x128xbf16>
    %12 = arith.maximumf %10, %11 : vector<34x128xbf16>
    %c68 = arith.constant 68 : index
    %c0_11 = arith.constant 0 : index
    %13 = vector.load %arg11[%c68, %c0_11] : memref<136x128xbf16, #tpu.memory_space<vmem>>, vector<32x128xbf16>
    %c102 = arith.constant 102 : index
    %c0_12 = arith.constant 0 : index
    %14 = vector.load %arg11[%c102, %c0_12] : memref<136x128xbf16, #tpu.memory_space<vmem>>, vector<32x128xbf16>
    %15 = arith.maximumf %13, %14 : vector<32x128xbf16>
    %cst_13 = arith.constant 0.000000e+00 : bf16
    %16 = vector.broadcast %cst_13 : bf16 to vector<2x128xbf16>
    %17 = tpu.concatenate %15, %16 in 0 : vector<32x128xbf16>, vector<2x128xbf16> -> vector<34x128xbf16>
    %18 = tpu.concatenate %12, %17 in 1 : vector<34x128xbf16>, vector<34x128xbf16> -> vector<34x256xbf16>
    %c0_14 = arith.constant 0 : index
    %c0_15 = arith.constant 0 : index
    %19 = vector.load %arg4[%c0_14, %c0_15] : memref<256x64xbf16, #tpu.memory_space<vmem>>, vector<256x64xbf16>
    %cst_16 = arith.constant dense<0.000000e+00> : vector<34x64xf32>
    %20 = tpu.matmul %18, %19, %cst_16 {dimension_numbers = #tpu.dot_dimension_numbers<[1], [0], [0], [1], [0, 0, 1, 1], [], []>} : vector<34x256xbf16>, vector<256x64xbf16>, vector<34x64xf32> -> vector<34x64xf32>
    %c0_17 = arith.constant 0 : index
    %c0_18 = arith.constant 0 : index
    %21 = vector.load %arg5[%c0_17, %c0_18] : memref<1x64xf32, #tpu.memory_space<vmem>>, vector<1x64xf32>
    %22 = vector.broadcast %21 : vector<1x64xf32> to vector<34x64xf32>
    %23 = arith.addf %20, %22 : vector<34x64xf32>
    %cst_19 = arith.constant 0.000000e+00 : f32
    %24 = vector.broadcast %cst_19 : f32 to vector<34x64xf32>
    %25 = arith.maximumf %23, %24 : vector<34x64xf32>
    %26 = arith.truncf %25 : vector<34x64xf32> to vector<34x64xbf16>
    %c0_20 = arith.constant 0 : index
    %c0_21 = arith.constant 0 : index
    %27 = vector.load %arg5[%c0_20, %c0_21] : memref<1x64xf32, #tpu.memory_space<vmem>>, vector<1x64xf32>
    %cst_22 = arith.constant 0.000000e+00 : f32
    %28 = vector.broadcast %cst_22 : f32 to vector<1x64xf32>
    %29 = arith.maximumf %27, %28 : vector<1x64xf32>
    %30 = arith.truncf %29 : vector<1x64xf32> to vector<1x64xbf16>
    %31 = vector.extract_strided_slice %26 {offsets = [0, 0], sizes = [2, 64], strides = [1, 1]} : vector<34x64xbf16> to vector<2x64xbf16>
    %32 = vector.broadcast %30 : vector<1x64xbf16> to vector<2x64xbf16>
    %33 = arith.maximumf %32, %31 : vector<2x64xbf16>
    %34 = vector.extract_strided_slice %26 {offsets = [0, 0], sizes = [32, 64], strides = [1, 1]} : vector<34x64xbf16> to vector<32x64xbf16>
    %35 = vector.extract_strided_slice %26 {offsets = [2, 0], sizes = [32, 64], strides = [1, 1]} : vector<34x64xbf16> to vector<32x64xbf16>
    %36 = arith.maximumf %34, %35 : vector<32x64xbf16>
    %37 = vector.extract_strided_slice %36 {offsets = [0, 0], sizes = [2, 64], strides = [1, 1]} : vector<32x64xbf16> to vector<2x64xbf16>
    %38 = vector.extract_strided_slice %36 {offsets = [2, 0], sizes = [2, 64], strides = [1, 1]} : vector<32x64xbf16> to vector<2x64xbf16>
    %39 = vector.extract_strided_slice %36 {offsets = [4, 0], sizes = [2, 64], strides = [1, 1]} : vector<32x64xbf16> to vector<2x64xbf16>
    %40 = vector.extract_strided_slice %36 {offsets = [6, 0], sizes = [2, 64], strides = [1, 1]} : vector<32x64xbf16> to vector<2x64xbf16>
    %41 = vector.extract_strided_slice %36 {offsets = [8, 0], sizes = [2, 64], strides = [1, 1]} : vector<32x64xbf16> to vector<2x64xbf16>
    %42 = vector.extract_strided_slice %36 {offsets = [10, 0], sizes = [2, 64], strides = [1, 1]} : vector<32x64xbf16> to vector<2x64xbf16>
    %43 = vector.extract_strided_slice %36 {offsets = [12, 0], sizes = [2, 64], strides = [1, 1]} : vector<32x64xbf16> to vector<2x64xbf16>
    %44 = vector.extract_strided_slice %36 {offsets = [14, 0], sizes = [2, 64], strides = [1, 1]} : vector<32x64xbf16> to vector<2x64xbf16>
    %45 = vector.extract_strided_slice %36 {offsets = [16, 0], sizes = [2, 64], strides = [1, 1]} : vector<32x64xbf16> to vector<2x64xbf16>
    %46 = vector.extract_strided_slice %36 {offsets = [18, 0], sizes = [2, 64], strides = [1, 1]} : vector<32x64xbf16> to vector<2x64xbf16>
    %47 = vector.extract_strided_slice %36 {offsets = [20, 0], sizes = [2, 64], strides = [1, 1]} : vector<32x64xbf16> to vector<2x64xbf16>
    %48 = vector.extract_strided_slice %36 {offsets = [22, 0], sizes = [2, 64], strides = [1, 1]} : vector<32x64xbf16> to vector<2x64xbf16>
    %49 = vector.extract_strided_slice %36 {offsets = [24, 0], sizes = [2, 64], strides = [1, 1]} : vector<32x64xbf16> to vector<2x64xbf16>
    %50 = vector.extract_strided_slice %36 {offsets = [26, 0], sizes = [2, 64], strides = [1, 1]} : vector<32x64xbf16> to vector<2x64xbf16>
    %51 = vector.extract_strided_slice %36 {offsets = [28, 0], sizes = [2, 64], strides = [1, 1]} : vector<32x64xbf16> to vector<2x64xbf16>
    %52 = vector.extract_strided_slice %36 {offsets = [30, 0], sizes = [2, 64], strides = [1, 1]} : vector<32x64xbf16> to vector<2x64xbf16>
    %53 = tpu.concatenate %33, %37, %38, %39, %40, %41, %42, %43, %44, %45, %46, %47, %48, %49, %50, %51 in 1 : vector<2x64xbf16>, vector<2x64xbf16>, vector<2x64xbf16>, vector<2x64xbf16>, vector<2x64xbf16>, vector<2x64xbf16>, vector<2x64xbf16>, vector<2x64xbf16>, vector<2x64xbf16>, vector<2x64xbf16>, vector<2x64xbf16>, vector<2x64xbf16>, vector<2x64xbf16>, vector<2x64xbf16>, vector<2x64xbf16>, vector<2x64xbf16> -> vector<2x1024xbf16>
    %54 = tpu.concatenate %53, %52 in 1 : vector<2x1024xbf16>, vector<2x64xbf16> -> vector<2x1088xbf16>
    %c0_23 = arith.constant 0 : index
    %c0_24 = arith.constant 0 : index
    %55 = vector.load %arg6[%c0_23, %c0_24] : memref<1088x512xbf16, #tpu.memory_space<vmem>>, vector<1088x512xbf16>
    %cst_25 = arith.constant dense<0.000000e+00> : vector<2x512xf32>
    %56 = tpu.matmul %54, %55, %cst_25 {dimension_numbers = #tpu.dot_dimension_numbers<[1], [0], [0], [1], [0, 0, 1, 1], [], []>} : vector<2x1088xbf16>, vector<1088x512xbf16>, vector<2x512xf32> -> vector<2x512xf32>
    %c0_26 = arith.constant 0 : index
    %c0_27 = arith.constant 0 : index
    %57 = vector.load %arg7[%c0_26, %c0_27] : memref<1x512xf32, #tpu.memory_space<vmem>>, vector<1x512xf32>
    %58 = vector.broadcast %57 : vector<1x512xf32> to vector<2x512xf32>
    %59 = arith.addf %56, %58 : vector<2x512xf32>
    %cst_28 = arith.constant 0.000000e+00 : f32
    %60 = vector.broadcast %cst_28 : f32 to vector<2x512xf32>
    %61 = arith.maximumf %59, %60 : vector<2x512xf32>
    %62 = arith.truncf %61 : vector<2x512xf32> to vector<2x512xbf16>
    %c0_29 = arith.constant 0 : index
    %c0_30 = arith.constant 0 : index
    %63 = vector.load %arg8[%c0_29, %c0_30] : memref<512x128xbf16, #tpu.memory_space<vmem>>, vector<512x128xbf16>
    %cst_31 = arith.constant dense<0.000000e+00> : vector<2x128xf32>
    %64 = tpu.matmul %62, %63, %cst_31 {dimension_numbers = #tpu.dot_dimension_numbers<[1], [0], [0], [1], [0, 0, 1, 1], [], []>} : vector<2x512xbf16>, vector<512x128xbf16>, vector<2x128xf32> -> vector<2x128xf32>
    %c0_32 = arith.constant 0 : index
    %c0_33 = arith.constant 0 : index
    %65 = vector.load %arg9[%c0_32, %c0_33] : memref<1x128xf32, #tpu.memory_space<vmem>>, vector<1x128xf32>
    %66 = vector.broadcast %65 : vector<1x128xf32> to vector<2x128xf32>
    %67 = arith.addf %64, %66 : vector<2x128xf32>
    %68 = arith.negf %67 : vector<2x128xf32>
    %69 = math.exp %68 : vector<2x128xf32>
    %cst_34 = arith.constant 1.000000e+00 : f32
    %70 = vector.broadcast %cst_34 : f32 to vector<2x128xf32>
    %71 = arith.addf %70, %69 : vector<2x128xf32>
    %72 = arith.divf %70, %71 : vector<2x128xf32>
    %c0_35 = arith.constant 0 : index
    %c0_36 = arith.constant 0 : index
    %73 = vector.load %arg10[%c0_35, %c0_36] : memref<2x128xf32, #tpu.memory_space<vmem>>, vector<2x128xf32>
    tpu.vector_store %arg10[%c0_35, %c0_36], %72 {strides = array<i32>} : memref<2x128xf32, #tpu.memory_space<vmem>>, vector<2x128xf32>,
    return
  }
  func.func @transform_0(%arg0: i32) -> (i32, i32) {
    %c0_i32 = arith.constant 0 : i32
    %c0_i32_0 = arith.constant 0 : i32
    return %arg0, %c0_i32 : i32, i32
  }
  func.func @transform_1(%arg0: i32) -> (i32, i32) {
    %c0_i32 = arith.constant 0 : i32
    %c0_i32_0 = arith.constant 0 : i32
    %c0_i32_1 = arith.constant 0 : i32
    return %c0_i32, %c0_i32_0 : i32, i32
  }
  func.func @transform_2(%arg0: i32) -> (i32, i32) {
    %c0_i32 = arith.constant 0 : i32
    %c0_i32_0 = arith.constant 0 : i32
    %c0_i32_1 = arith.constant 0 : i32
    return %c0_i32, %c0_i32_0 : i32, i32
  }
  func.func @transform_3(%arg0: i32) -> (i32, i32) {
    %c0_i32 = arith.constant 0 : i32
    %c0_i32_0 = arith.constant 0 : i32
    %c0_i32_1 = arith.constant 0 : i32
    return %c0_i32, %c0_i32_0 : i32, i32
  }
  func.func @transform_4(%arg0: i32) -> (i32, i32) {
    %c0_i32 = arith.constant 0 : i32
    %c0_i32_0 = arith.constant 0 : i32
    %c0_i32_1 = arith.constant 0 : i32
    return %c0_i32, %c0_i32_0 : i32, i32
  }
  func.func @transform_5(%arg0: i32) -> (i32, i32) {
    %c0_i32 = arith.constant 0 : i32
    %c0_i32_0 = arith.constant 0 : i32
    %c0_i32_1 = arith.constant 0 : i32
    return %c0_i32, %c0_i32_0 : i32, i32
  }
  func.func @transform_6(%arg0: i32) -> (i32, i32) {
    %c0_i32 = arith.constant 0 : i32
    %c0_i32_0 = arith.constant 0 : i32
    %c0_i32_1 = arith.constant 0 : i32
    return %c0_i32, %c0_i32_0 : i32, i32
  }
  func.func @transform_7(%arg0: i32) -> (i32, i32) {
    %c0_i32 = arith.constant 0 : i32
    %c0_i32_0 = arith.constant 0 : i32
    %c0_i32_1 = arith.constant 0 : i32
    return %c0_i32, %c0_i32_0 : i32, i32
  }
  func.func @transform_8(%arg0: i32) -> (i32, i32) {
    %c0_i32 = arith.constant 0 : i32
    %c0_i32_0 = arith.constant 0 : i32
    %c0_i32_1 = arith.constant 0 : i32
    return %c0_i32, %c0_i32_0 : i32, i32
  }
  func.func @transform_9(%arg0: i32) -> (i32, i32) {
    %c0_i32 = arith.constant 0 : i32
    %c0_i32_0 = arith.constant 0 : i32
    return %arg0, %c0_i32 : i32, i32
  }
}

</mosaic_0001>

<bundles_post_ra>
// kernel: _lambda_.1
= control target key start
LH: loop header
LB: loop body
LE: loop exit
PB: predicated region body
PF: predicated region fallthrough
CT: control target
= control target key end

     0   :  { %s6927_s0 = inlined_call_operand.vmem [shape: bf16[136,768], index: 0, kind: input, shape index: {}]   ;;  %s6928_s1 = inlined_call_operand.vmem [shape: bf16[768,128], index: 1, kind: input, shape index: {}]   ;;  %s6929_s2 = inlined_call_operand.vmem [shape: f32[1,128], index: 2, kind: input, shape index: {}]   ;;  %s6930_s3 = inlined_call_operand.vmem [shape: bf16[256,64], index: 3, kind: input, shape index: {}]   ;;  %s6931_s4 = inlined_call_operand.vmem [shape: f32[1,64], index: 4, kind: input, shape index: {}]   ;;  %s6932_s5 = inlined_call_operand.vmem [shape: bf16[1088,512], index: 5, kind: input, shape index: {}]   ;;  %s6933_s6 = inlined_call_operand.vmem [shape: f32[1,512], index: 6, kind: input, shape index: {}]   ;;  %s6934_s7 = inlined_call_operand.vmem [shape: bf16[512,128], index: 7, kind: input, shape index: {}]   ;;  %s6935_s8 = inlined_call_operand.vmem [shape: f32[1,128], index: 8, kind: input, shape index: {}]   ;;  %s6936_s9 = inlined_call_operand.hbm [shape: f32[2,128], index: 9, kind: output, shape index: {}]  }
   0x1   :  { %v4839_v0 = vld [vmem:[%s6928_s1 + $0x40] sm:$0xff]   ;;  %v4843_v4 = vld [vmem:[%s6928_s1 + $0x48] sm:$0xff]   ;;  %v4847_v8 = vld [vmem:[%s6928_s1 + $0x50] sm:$0xff]  }
   0x2   :  { %v4840_v1 = vld [vmem:[%s6928_s1] sm:$0xff]   ;;  %4512 = vmatprep.subr.bf16.mxu0 %v4839_v0  ;;  %v4844_v5 = vld [vmem:[%s6928_s1 + $0x8] sm:$0xff]   ;;  %v4848_v9 = vld [vmem:[%s6928_s1 + $0x10] sm:$0xff]  }
   0x3   :  { %v4841_v2 = vld [vmem:[%s6928_s1 + $0xc0] sm:$0xff]   ;;  %4513 = vmatpush3.bf16.msra.mxu0 %v4840_v1  ;;  %v4845_v6 = vld [vmem:[%s6928_s1 + $0xc8] sm:$0xff]   ;;  %v4849_v10 = vld [vmem:[%s6928_s1 + $0xd0] sm:$0xff]  }
   0x4   :  { %v4842_v3 = vld [vmem:[%s6928_s1 + $0x80] sm:$0xff]   ;;  %4582 = vmatprep.subr.bf16.mxu1 %v4841_v2  ;;  %4514 = vmatprep.subr.bf16.mxu0 %v4843_v4  ;;  %v4846_v7 = vld [vmem:[%s6928_s1 + $0x88] sm:$0xff]   ;;  %v4850_v11 = vld [vmem:[%s6928_s1 + $0x90] sm:$0xff]  }
   0x5   :  { %4583 = vmatpush3.bf16.msra.mxu1 %v4842_v3  ;;  %v4851_v12 = vld [vmem:[%s6928_s1 + $0x58] sm:$0xff]   ;;  %v4855_v16 = vld [vmem:[%s6928_s1 + $0x60] sm:$0xff]   ;;  %v4859_v20 = vld [vmem:[%s6928_s1 + $0x68] sm:$0xff]  }
   0x6   :  { %4584 = vmatprep.subr.bf16.mxu1 %v4845_v6  ;;  %v4852_v13 = vld [vmem:[%s6928_s1 + $0x18] sm:$0xff]   ;;  %v4856_v17 = vld [vmem:[%s6928_s1 + $0x20] sm:$0xff]   ;;  %v4860_v21 = vld [vmem:[%s6928_s1 + $0x28] sm:$0xff]  }
   0x7   :  { %4515 = vmatpush3.bf16.msra.mxu0 %v4844_v5  ;;  %v4853_v14 = vld [vmem:[%s6928_s1 + $0xd8] sm:$0xff]   ;;  %v4857_v18 = vld [vmem:[%s6928_s1 + $0xe0] sm:$0xff]   ;;  %v4861_v22 = vld [vmem:[%s6928_s1 + $0xe8] sm:$0xff]  }
   0x8   :  { %4516 = vmatprep.subr.bf16.mxu0 %v4847_v8  ;;  %v4854_v15 = vld [vmem:[%s6928_s1 + $0x98] sm:$0xff]   ;;  %v4858_v19 = vld [vmem:[%s6928_s1 + $0xa0] sm:$0xff]   ;;  %v4862_v23 = vld [vmem:[%s6928_s1 + $0xa8] sm:$0xff]  }
   0x9   :  { %4585 = vmatpush3.bf16.msra.mxu1 %v4846_v7  ;;  %v4863_v24 = vld [vmem:[%s6928_s1 + $0x70] sm:$0xff]   ;;  %v4867_v28 = vld [vmem:[%s6928_s1 + $0x78] sm:$0xff]   ;;  %v4874_v34 = vld [vmem:[%s6928_s1 + $0x140] sm:$0xff]  }
   0xa   :  { %4586 = vmatprep.subr.bf16.mxu1 %v4849_v10  ;;  %v4864_v25 = vld [vmem:[%s6928_s1 + $0x30] sm:$0xff]   ;;  %v4868_v29 = vld [vmem:[%s6928_s1 + $0x38] sm:$0xff]   ;;  %v4875_v35 = vld [vmem:[%s6927_s0 + $0x8] ss:$24 sps:$4 sm:$0xff]  }
   0xb   :  { %4517 = vmatpush3.bf16.msra.mxu0 %v4848_v9  ;;  %v4865_v26 = vld [vmem:[%s6928_s1 + $0xf0] sm:$0xff]   ;;  %v4869_v30 = vld [vmem:[%s6928_s1 + $0xf8] sm:$0xff]   ;;  %v4877_v36 = vld [vmem:[%s6927_s0 + $0xc] ss:$24 sps:$4 sm:$0xff]  }
   0xc   :  { %4518 = vmatprep.subr.bf16.mxu0 %v4851_v12  ;;  %v4866_v27 = vld [vmem:[%s6928_s1 + $0xb0] sm:$0xff]   ;;  %v4870_v31 = vld [vmem:[%s6927_s0] ss:$24 sps:$4 sm:$0xff]   ;;  %v4872_v32 = vld [vmem:[%s6927_s0 + $0x4] ss:$24 sps:$4 sm:$0xff]   ;;  %873 = vmatprep.mubr.bf16.mxu1 %v4877_v36 }
   0xd   :  { %4587 = vmatpush3.bf16.msra.mxu1 %v4850_v11  ;;  %v4873_v33 = vld [vmem:[%s6928_s1 + $0xb8] sm:$0xff]   ;;  %769 = vmatprep.mubr.bf16.mxu0 %v4872_v32  ;;  %v4878_v37 = vld [vmem:[%s6928_s1 + $0x100] sm:$0xff]   ;;  %v4879_v38 = vld [vmem:[%s6927_s0 + $0x34] ss:$24 sps:$4 sm:$0xff]  }
   0xe   :  { %4588 = vmatprep.subr.bf16.mxu1 %v4853_v14  ;;  %v4881_v39 = vld [vmem:[%s6927_s0 + $0x30] ss:$24 sps:$4 sm:$0xff]   ;;  %v4882_v40 = vld [vmem:[%s6927_s0 + $0x3c] ss:$24 sps:$4 sm:$0xff]   ;;  %v4890_v45 = vld [vmem:[%s6927_s0 + $0x6c] ss:$24 sps:$4 sm:$0xff]  }
   0xf   :  { %4519 = vmatpush3.bf16.msra.mxu0 %v4852_v13  ;;  %v4884_v41 = vld [vmem:[%s6928_s1 + $0x148] sm:$0xff]   ;;  %v4885_v43 = vld [vmem:[%s6927_s0 + $0x38] ss:$24 sps:$4 sm:$0xff]   ;;  %v4887_v44 = vld [vmem:[%s6927_s0 + $0x64] ss:$24 sps:$4 sm:$0xff]  }
  0x10   :  { %4520 = vmatprep.subr.bf16.mxu0 %v4855_v16  ;;  %v4886_v42 = vld [vmem:[%s6928_s1 + $0x108] sm:$0xff]   ;;  %v4893_v46 = vld [vmem:[%s6928_s1 + $0x150] sm:$0xff]   ;;  %v4889_v48 = vld [vmem:[%s6927_s0 + $0x60] ss:$24 sps:$4 sm:$0xff]  }
  0x11   :  { %4589 = vmatpush3.bf16.msra.mxu1 %v4854_v15  ;;  %v4894_v47 = vld [vmem:[%s6928_s1 + $0x110] sm:$0xff]   ;;  %v4892_v49 = vld [vmem:[%s6927_s0 + $0x68] ss:$24 sps:$4 sm:$0xff]   ;;  %v4901_v51 = vld [vmem:[%s6928_s1 + $0x158] sm:$0xff]  }
  0x12   :  { %4590 = vmatprep.subr.bf16.mxu1 %v4857_v18  ;;  %v4895_v50 = vld [vmem:[%s6927_s0 + $0x94] ss:$24 sps:$4 sm:$0xff]   ;;  %v4902_v52 = vld [vmem:[%s6928_s1 + $0x118] sm:$0xff]   ;;  %v4897_v54 = vld [vmem:[%s6927_s0 + $0x90] ss:$24 sps:$4 sm:$0xff]  }
  0x13   :  { %4521 = vmatpush3.bf16.msra.mxu0 %v4856_v17  ;;  %v4898_v53 = vld [vmem:[%s6927_s0 + $0x9c] ss:$24 sps:$4 sm:$0xff]   ;;  %v4909_v55 = vld [vmem:[%s6928_s1 + $0x160] sm:$0xff]   ;;  %v4900_v58 = vld [vmem:[%s6927_s0 + $0x98] ss:$24 sps:$4 sm:$0xff]  }
  0x14   :  { %4522 = vmatprep.subr.bf16.mxu0 %v4859_v20  ;;  %v4910_v56 = vld [vmem:[%s6928_s1 + $0x120] sm:$0xff]   ;;  %v4917_v60 = vld [vmem:[%s6928_s1 + $0x168] sm:$0xff]   ;;  %v4925_v63 = vld [vmem:[%s6928_s1 + $0x170] sm:$0xff]  }
  0x15   :  { %4591 = vmatpush3.bf16.msra.mxu1 %v4858_v19  ;;  %v4903_v57 = vld [vmem:[%s6927_s0 + $0xc4] ss:$24 sps:$4 sm:$0xff]   ;;  %v4918_v61 = vld [vmem:[%s6928_s1 + $0x128] sm:$0xff]   ;;  %v4905_v62 = vld [vmem:[%s6927_s0 + $0xc0] ss:$24 sps:$4 sm:$0xff]  }
  0x16   :  { %4592 = vmatprep.subr.bf16.mxu1 %v4861_v22  ;;  %v4906_v59 = vld [vmem:[%s6927_s0 + $0xcc] ss:$24 sps:$4 sm:$0xff]   ;;  %v4928_v1 = vld [vmem:[%s6928_s1 + $0x130] sm:$0xff]   ;;  %v4908_v2 = vld [vmem:[%s6927_s0 + $0xc8] ss:$24 sps:$4 sm:$0xff]  }
  0x17   :  { %4523 = vmatpush3.bf16.msra.mxu0 %v4860_v21  ;;  %v4911_v0 = vld [vmem:[%s6927_s0 + $0xf4] ss:$24 sps:$4 sm:$0xff]   ;;  %v4934_v4 = vld [vmem:[%s6928_s1 + $0x178] sm:$0xff]   ;;  %v4913_v6 = vld [vmem:[%s6927_s0 + $0xf0] ss:$24 sps:$4 sm:$0xff]  }
  0x18   :  { %4524 = vmatprep.subr.bf16.mxu0 %v4863_v24  ;;  %v4914_v3 = vld [vmem:[%s6927_s0 + $0xfc] ss:$24 sps:$4 sm:$0xff]   ;;  %v4916_v8 = vld [vmem:[%s6927_s0 + $0xf8] ss:$24 sps:$4 sm:$0xff]   ;;  %v4922_v9 = vld [vmem:[%s6927_s0 + $0x12c] ss:$24 sps:$4 sm:$0xff]  }
  0x19   :  { %4593 = vmatpush3.bf16.msra.mxu1 %v4862_v23  ;;  %v4936_v5 = vld [vmem:[%s6928_s1 + $0x138] sm:$0xff]   ;;  %v4924_v11 = vld [vmem:[%s6927_s0 + $0x128] ss:$24 sps:$4 sm:$0xff]   ;;  %v4926_v12 = vld [vmem:[%s6927_s0 + $0x154] ss:$24 sps:$4 sm:$0xff]  }
  0x1a   :  { %4594 = vmatprep.subr.bf16.mxu1 %v4865_v26  ;;  %v4919_v7 = vld [vmem:[%s6927_s0 + $0x124] ss:$24 sps:$4 sm:$0xff]   ;;  %v4921_v10 = vld [vmem:[%s6927_s0 + $0x120] ss:$24 sps:$4 sm:$0xff]   ;;  %v4929_v15 = vld [vmem:[%s6927_s0 + $0x150] ss:$24 sps:$4 sm:$0xff]  }
  0x1b   :  { %4525 = vmatpush3.bf16.msra.mxu0 %v4864_v25  ;;  %v4930_v13 = vld [vmem:[%s6927_s0 + $0x15c] ss:$24 sps:$4 sm:$0xff]   ;;  %v82_v14 = vld [vmem:[%s6927_s0 + $0x180] sm:$0xff]  ;;  %v83_v16 = vld [vmem:[%s6927_s0 + $0x188] sm:$0xff] }
  0x1c   :  { %4526 = vmatprep.subr.bf16.mxu0 %v4867_v28  ;;  %v4932_v17 = vld [vmem:[%s6927_s0 + $0x158] ss:$24 sps:$4 sm:$0xff]   ;;  %v4046_v18 = vcombine.high %v82_v14, %v82_v14  ;;  %v4048_v19 = vcombine.high %v83_v16, %v83_v16  ;;  %v4941_v20 = vld [vmem:[%s6927_s0 + $0x14] ss:$24 sps:$4 sm:$0xff]   ;;  %v4045_v21 = vcombine.low %v82_v14, %v82_v14  ;;  %v4047_v22 = vcombine.low %v83_v16, %v83_v16  ;;  %v4942_v24 = vld [vmem:[%s6927_s0 + $0x44] ss:$24 sps:$4 sm:$0xff]  }
  0x1d   :  { %4595 = vmatpush3.bf16.msra.mxu1 %v4866_v27  ;;  %v4939_v23 = vld [vmem:[%s6927_s0 + $0x10] ss:$24 sps:$4 sm:$0xff]   ;;  %v4944_v25 = vld [vmem:[%s6927_s0 + $0x40] ss:$24 sps:$4 sm:$0xff]   ;;  %v4945_v26 = vld [vmem:[%s6927_s0 + $0x74] ss:$24 sps:$4 sm:$0xff]  }
  0x1e   :  { %4596 = vmatprep.subr.bf16.mxu1 %v4869_v30  ;;  %v4947_v27 = vld [vmem:[%s6927_s0 + $0x70] ss:$24 sps:$4 sm:$0xff]   ;;  %v4948_v28 = vld [vmem:[%s6927_s0 + $0xa4] ss:$24 sps:$4 sm:$0xff]   ;;  %v4951_v30 = vld [vmem:[%s6927_s0 + $0xd4] ss:$24 sps:$4 sm:$0xff]  }
  0x1f   :  { %4527 = vmatpush3.bf16.msra.mxu0 %v4868_v29  ;;  %v4950_v29 = vld [vmem:[%s6927_s0 + $0xa0] ss:$24 sps:$4 sm:$0xff]   ;;  %v4954_v32 = vld [vmem:[%s6927_s0 + $0x104] ss:$24 sps:$4 sm:$0xff]  }
  0x20   :  { %4652 = vmatprep.subr.bf16.mxu0 %v4874_v34  ;;  %v4957_v34 = vld [vmem:[%s6927_s0 + $0x134] ss:$24 sps:$4 sm:$0xff]   ;;  %v4960_v36 = vld [vmem:[%s6927_s0 + $0x164] ss:$24 sps:$4 sm:$0xff]  }
  0x21   :  { %4597 = vmatpush3.bf16.msra.mxu1 %v4873_v33  ;;  %v4956_v33 = vld [vmem:[%s6927_s0 + $0x100] ss:$24 sps:$4 sm:$0xff]  }
  0x22   :  { %770 = vmatmul.mubr.bf16.vlgmr.msra.gmra.mrb[0].mxu0 %v4870_v31  ;;  %v4953_v31 = vld [vmem:[%s6927_s0 + $0xd0] ss:$24 sps:$4 sm:$0xff]  }
  0x23   :  { %4653 = vmatpush3.bf16.msra.mxu0 %v4878_v37  ;;  %777 = vmatprep.mubr.bf16.mxu0 %v4879_v38  ;;  %v84_v37 = vld [vmem:[%s6927_s0 + $0x190] sm:$0xff]  ;;  %v4962_v38 = vld [vmem:[%s6927_s0 + $0x160] ss:$24 sps:$4 sm:$0xff]  }
  0x24   :  { %874 = vmatmul.mubr.bf16.vlgmr.msra.gmra.mrb[0].mxu1 %v4875_v35  ;;  %4654 = vmatprep.subr.bf16.mxu0 %v4884_v41  ;;  %v4959_v35 = vld [vmem:[%s6927_s0 + $0x130] ss:$24 sps:$4 sm:$0xff]  }
  0x25   :  { %881 = vmatprep.mubr.bf16.mxu1 %v4882_v40  ;;  %v4049_v40 = vcombine.low %v84_v37, %v84_v37 }
  0x27   :  { %4655 = vmatpush3.bf16.msra.mxu0 %v4886_v42 }
  0x28   :  { %4656 = vmatprep.subr.bf16.mxu0 %v4893_v46 }
  0x2a   :  { %778 = vmatmul.mubr.bf16.gmra.mrb[4].mxu0 %v4881_v39  ;;  %v4050_v39 = vcombine.high %v84_v37, %v84_v37 }
  0x2b   :  { %785 = vmatprep.mubr.bf16.mxu0 %v4887_v44  ;;  %4657 = vmatpush3.bf16.msra.mxu0 %v4894_v47 }
  0x2c   :  { %882 = vmatmul.mubr.bf16.gmra.mrb[4].mxu1 %v4885_v43  ;;  %4658 = vmatprep.subr.bf16.mxu0 %v4901_v51 }
  0x2d   :  { %889 = vmatprep.mubr.bf16.mxu1 %v4890_v45 }
  0x2f   :  { %4659 = vmatpush3.bf16.msra.mxu0 %v4902_v52 }
  0x30   :  { %4660 = vmatprep.subr.bf16.mxu0 %v4909_v55 }
  0x32   :  { %786 = vmatmul.mubr.bf16.gmra.mrb[8].mxu0 %v4889_v48 }
  0x33   :  { %793 = vmatprep.mubr.bf16.mxu0 %v4895_v50  ;;  %4661 = vmatpush3.bf16.msra.mxu0 %v4910_v56 }
  0x34   :  { %890 = vmatmul.mubr.bf16.gmra.mrb[8].mxu1 %v4892_v49  ;;  %4662 = vmatprep.subr.bf16.mxu0 %v4917_v60 }
  0x35   :  { %897 = vmatprep.mubr.bf16.mxu1 %v4898_v53 }
  0x37   :  { %4663 = vmatpush3.bf16.msra.mxu0 %v4918_v61 }
  0x38   :  { %4664 = vmatprep.subr.bf16.mxu0 %v4925_v63 }
  0x3a   :  { %794 = vmatmul.mubr.bf16.gmra.mrb[12].mxu0 %v4897_v54 }
  0x3b   :  { %801 = vmatprep.mubr.bf16.mxu0 %v4903_v57  ;;  %4665 = vmatpush3.bf16.msra.mxu0 %v4928_v1 }
  0x3c   :  { %898 = vmatmul.mubr.bf16.gmra.mrb[12].mxu1 %v4900_v58  ;;  %4666 = vmatprep.subr.bf16.mxu0 %v4934_v4 }
  0x3d   :  { %905 = vmatprep.mubr.bf16.mxu1 %v4906_v59 }
  0x3f   :  { %4667 = vmatpush3.bf16.msra.mxu0 %v4936_v5 }
  0x42   :  { %802 = vmatmul.mubr.bf16.gmra.mrb[16].mxu0 %v4905_v62 }
  0x43   :  { %809 = vmatprep.mubr.bf16.mxu0 %v4911_v0 }
  0x44   :  { %906 = vmatmul.mubr.bf16.gmra.mrb[16].mxu1 %v4908_v2 }
  0x45   :  { %913 = vmatprep.mubr.bf16.mxu1 %v4914_v3 }
  0x4a   :  { %810 = vmatmul.mubr.bf16.gmra.mrb[20].mxu0 %v4913_v6 }
  0x4b   :  { %817 = vmatprep.mubr.bf16.mxu0 %v4919_v7 }
  0x4c   :  { %914 = vmatmul.mubr.bf16.gmra.mrb[20].mxu1 %v4916_v8 }
  0x4d   :  { %921 = vmatprep.mubr.bf16.mxu1 %v4922_v9 }
  0x52   :  { %818 = vmatmul.mubr.bf16.gmra.mrb[24].mxu0 %v4921_v10 }
  0x53   :  { %825 = vmatprep.mubr.bf16.mxu0 %v4926_v12 }
  0x54   :  { %922 = vmatmul.mubr.bf16.gmra.mrb[24].mxu1 %v4924_v11 }
  0x55   :  { %929 = vmatprep.mubr.bf16.mxu1 %v4930_v13 }
  0x5a   :  { %826 = vmatmul.mubr.bf16.gmra.mrb[28].mxu0 %v4929_v15 }
  0x5b   :  { %833 = vmatprep.mubr.bf16.mxu0 %v4046_v18 }
  0x5c   :  { %930 = vmatmul.mubr.bf16.gmra.mrb[28].mxu1 %v4932_v17 }
  0x5d   :  { %937 = vmatprep.mubr.bf16.mxu1 %v4048_v19 }
  0x62   :  { %834 = vmatmul.mubr.bf16.gmra.mrb[32].mxu0 %v4045_v21 }
  0x63   :  { %977 = vmatprep.mubr.bf16.mxu0 %v4941_v20 }
  0x64   :  { %938 = vmatmul.mubr.bf16.gmra.mrb[32].mxu1 %v4047_v22 }
  0x6a   :  { %978 = vmatmul.mubr.bf16.vlgmr.msra.gmra.mrb[36].mxu0 %v4939_v23 }
  0x6b   :  { %985 = vmatprep.mubr.bf16.mxu0 %v4942_v24 }
  0x72   :  { %986 = vmatmul.mubr.bf16.gmra.mrb[40].mxu0 %v4944_v25 }
  0x73   :  { %993 = vmatprep.mubr.bf16.mxu0 %v4945_v26 }
  0x7a   :  { %994 = vmatmul.mubr.bf16.gmra.mrb[44].mxu0 %v4947_v27 }
  0x7b   :  { %1001 = vmatprep.mubr.bf16.mxu0 %v4948_v28 }
  0x82   :  { %1002 = vmatmul.mubr.bf16.gmra.mrb[48].mxu0 %v4950_v29 }
  0x83   :  { %1009 = vmatprep.mubr.bf16.mxu0 %v4951_v30 }
  0x8a   :  { %1010 = vmatmul.mubr.bf16.gmra.mrb[52].mxu0 %v4953_v31 }
  0x8b   :  { %1017 = vmatprep.mubr.bf16.mxu0 %v4954_v32 }
  0x92   :  { %1018 = vmatmul.mubr.bf16.gmra.mrb[56].mxu0 %v4956_v33 }
  0x93   :  { %1025 = vmatprep.mubr.bf16.mxu0 %v4957_v34 }
  0x9a   :  { %1026 = vmatmul.mubr.bf16.gmra.mrb[60].mxu0 %v4959_v35 }
  0x9b   :  { %1033 = vmatprep.mubr.bf16.mxu0 %v4960_v36 }
  0xa2   :  { %1034 = vmatmul.mubr.bf16.gmra.mrb[64].mxu0 %v4962_v38 }
  0xa3   :  { %1041 = vmatprep.mubr.bf16.mxu0 %v4050_v39 }
  0xaa   :  { %1042 = vmatmul.mubr.bf16.gmra.mrb[68].mxu0 %v4049_v40 }
  0xab   :  { %14 = vsyncpa [#allocation4], 0  ;;  %v4965_v41 = vld [vmem:[%s6930_s3 + $0x40] sm:$0xff]   ;;  %v4967_v43 = vld [vmem:[%s6930_s3 + $0x48] sm:$0xff]   ;;  %vm1167_vm0 = vcmask 1042432   ;;  %vm1168_vm1 = vcmask 1046532  }
  0xac   :  { %v4966_v42 = vld [vmem:[%s6930_s3] sm:$0xff]   ;;  %4722 = vmatprep.subr.bf16.mxu1 %v4965_v41  ;;  %v4968_v44 = vld [vmem:[%s6930_s3 + $0x8] sm:$0xff]   ;;  %v4969_v45 = vld [vmem:[%s6930_s3 + $0x50] sm:$0xff]   ;;  %vm1246_vm3 = vcmask 1045504   ;;  %vm1482_vm4 = vcmask 1046528   ;;  %s5450_s1 = smov 64  }
  0xad   :  { %4723 = vmatpush3.bf16.msra.mxu1 %v4966_v42  ;;  %v4970_v46 = vld [vmem:[%s6930_s3 + $0x10] sm:$0xff]   ;;  %v4971_v47 = vld [vmem:[%s6930_s3 + $0x58] sm:$0xff]   ;;  %v5826_v50 = vld [vmem:[%s6929_s2] ss:$0 sm:$0xff]  ;;  %vm1523_vm5 = vcmask 523264   ;;  %s5451_s16 = smov [#allocation3]  }
  0xae   :  { %4724 = vmatprep.subr.bf16.mxu1 %v4967_v43  ;;  %v4972_v48 = vld [vmem:[%s6930_s3 + $0x18] sm:$0xff]   ;;  %v4973_v63 = vld [vmem:[%s6930_s3 + $0x60] sm:$0xff]   ;;  %v4975_v24 = vld [vmem:[%s6930_s3 + $0x68] sm:$0xff]   ;;  %s3988_s17 = sshll.u32 %s5451_s16, 4  ;;  %s3989_s17 = int_to_ptr.vmem [resolvable:$true] %s3988_s17 }
  0xaf   :  { %v4974_v0 = vld [vmem:[%s6930_s3 + $0x20] sm:$0xff]   ;;  %v4976_v25 = vld [vmem:[%s6930_s3 + $0x28] sm:$0xff]   ;;  %v4977_v26 = vld [vmem:[%s6930_s3 + $0x70] sm:$0xff]   ;;  %p5430_p1 = scmp.lt.s32.totalorder %s3989_s17, %s3989_s17 }
  0xb0   :  { %v4978_v34 = vld [vmem:[%s6930_s3 + $0x30] sm:$0xff]   ;;  %v4979_v37 = vld [vmem:[%s6930_s3 + $0x78] sm:$0xff]   ;;  %vm5920_vm2 = vmor %vm1167_vm0, %vm1168_vm1 }
  0xb1   :  { %4725 = vmatpush3.bf16.msra.mxu1 %v4968_v44  ;;  %v4980_v43 = vld [vmem:[%s6930_s3 + $0x38] sm:$0xff]  }
  0xb2   :  { %4726 = vmatprep.subr.bf16.mxu1 %v4969_v45 }
  0xb5   :  { %4727 = vmatpush3.bf16.msra.mxu1 %v4970_v46 }
  0xb6   :  { %4728 = vmatprep.subr.bf16.mxu1 %v4971_v47 }
  0xb9   :  { %4729 = vmatpush3.bf16.msra.mxu1 %v4972_v48 }
  0xba   :  { %4730 = vmatprep.subr.bf16.mxu1 %v4973_v63 }
  0xbd   :  { %4731 = vmatpush3.bf16.msra.mxu1 %v4974_v0 }
  0xbe   :  { %4732 = vmatprep.subr.bf16.mxu1 %v4975_v24 }
  0xc1   :  { %4733 = vmatpush3.bf16.msra.mxu1 %v4976_v25 }
  0xc2   :  { %4734 = vmatprep.subr.bf16.mxu1 %v4977_v26 }
  0xc5   :  { %4735 = vmatpush3.bf16.msra.mxu1 %v4978_v34 }
  0xc6   :  { %4736 = vmatprep.subr.bf16.mxu1 %v4979_v37 }
  0xc9   :  { %4737 = vmatpush3.bf16.msra.mxu1 %v4980_v43 }
  0xf5   :  { %v4528_v49 = vpop.f32.mrb[0].mxu0 }
  0xf6   :  { %v4529_v51 = vpop.f32.mrb[1].mxu0 }
  0xf7   :  { %v4530_v52 = vadd.f32 %v4529_v51, %v4528_v49  ;;  %v4531_v53 = vpop.f32.mrb[2].mxu0  ;;  %v4598_v54 = vpop.f32.mrb[0].mxu1 }
  0xf8   :  { %v4532_v55 = vpop.f32.mrb[3].mxu0  ;;  %v4599_v58 = vpop.f32.mrb[1].mxu1 }
  0xf9   :  { %v772_v56 = vadd.f32 %v4530_v52, %v5826_v50  ;;  %v4533_v57 = vadd.f32 %v4532_v55, %v4531_v53  ;;  %v4600_v59 = vadd.f32 %v4599_v58, %v4598_v54  ;;  %v4601_v60 = vpop.f32.mrb[2].mxu1 }
  0xfa   :  { %v4602_v62 = vpop.f32.mrb[3].mxu1 }
  0xfb   :  { %v775_v61 = vadd.f32 %v4533_v57, %v5826_v50  ;;  %v5836_v1 = vadd.f32 %v4600_v59, %v772_v56  ;;  %v4603_v2 = vadd.f32 %v4602_v62, %v4601_v60 }
  0xfd   :  { %v4534_v3 = vpop.f32.mrb[4].mxu0  ;;  %v5838_v4 = vadd.f32 %v4603_v2, %v775_v61 }
  0xfe   :  { %v4535_v5 = vpop.f32.mrb[5].mxu0 }
  0xff   :  { %v4536_v6 = vadd.f32 %v4535_v5, %v4534_v3  ;;  %v4537_v7 = vpop.f32.mrb[6].mxu0  ;;  %v4604_v8 = vpop.f32.mrb[4].mxu1 }
 0x100   :  { %v4538_v9 = vpop.f32.mrb[7].mxu0  ;;  %v4605_v12 = vpop.f32.mrb[5].mxu1 }
 0x101   :  { %v780_v10 = vadd.f32 %v4536_v6, %v5826_v50  ;;  %v4539_v11 = vadd.f32 %v4538_v9, %v4537_v7  ;;  %v4606_v13 = vadd.f32 %v4605_v12, %v4604_v8  ;;  %v4607_v14 = vpop.f32.mrb[6].mxu1 }
 0x102   :  { %v4608_v16 = vpop.f32.mrb[7].mxu1 }
 0x103   :  { %v783_v15 = vadd.f32 %v4539_v11, %v5826_v50  ;;  %v5842_v17 = vadd.f32 %v4606_v13, %v780_v10  ;;  %v4609_v18 = vadd.f32 %v4608_v16, %v4607_v14 }
 0x105   :  { %v4540_v19 = vpop.f32.mrb[8].mxu0  ;;  %v5844_v20 = vadd.f32 %v4609_v18, %v783_v15 }
 0x106   :  { %v4541_v21 = vpop.f32.mrb[9].mxu0 }
 0x107   :  { %v4542_v22 = vadd.f32 %v4541_v21, %v4540_v19  ;;  %v4543_v23 = vpop.f32.mrb[10].mxu0  ;;  %v4610_v27 = vpop.f32.mrb[8].mxu1 }
 0x108   :  { %v4544_v28 = vpop.f32.mrb[11].mxu0  ;;  %v4611_v31 = vpop.f32.mrb[9].mxu1 }
 0x109   :  { %v788_v29 = vadd.f32 %v4542_v22, %v5826_v50  ;;  %v4545_v30 = vadd.f32 %v4544_v28, %v4543_v23  ;;  %v4612_v32 = vadd.f32 %v4611_v31, %v4610_v27  ;;  %v4613_v33 = vpop.f32.mrb[10].mxu1 }
 0x10a   :  { %v4614_v36 = vpop.f32.mrb[11].mxu1 }
 0x10b   :  { %v791_v35 = vadd.f32 %v4545_v30, %v5826_v50  ;;  %v5863_v38 = vadd.f32 %v4612_v32, %v788_v29  ;;  %v4615_v39 = vadd.f32 %v4614_v36, %v4613_v33 }
 0x10d   :  { %v4546_v40 = vpop.f32.mrb[12].mxu0  ;;  %v5865_v41 = vadd.f32 %v4615_v39, %v791_v35 }
 0x10e   :  { %v4547_v42 = vpop.f32.mrb[13].mxu0 }
 0x10f   :  { %v4548_v44 = vadd.f32 %v4547_v42, %v4546_v40  ;;  %v4549_v45 = vpop.f32.mrb[14].mxu0  ;;  %v4616_v46 = vpop.f32.mrb[12].mxu1 }
 0x110   :  { %v4550_v47 = vpop.f32.mrb[15].mxu0  ;;  %v4617_v51 = vpop.f32.mrb[13].mxu1 }
 0x111   :  { %v796_v48 = vadd.f32 %v4548_v44, %v5826_v50  ;;  %v4551_v49 = vadd.f32 %v4550_v47, %v4549_v45  ;;  %v4618_v52 = vadd.f32 %v4617_v51, %v4616_v46  ;;  %v4619_v53 = vpop.f32.mrb[14].mxu1 }
 0x112   :  { %v4620_v55 = vpop.f32.mrb[15].mxu1 }
 0x113   :  { %v799_v54 = vadd.f32 %v4551_v49, %v5826_v50  ;;  %v5872_v56 = vadd.f32 %v4618_v52, %v796_v48  ;;  %v4621_v57 = vadd.f32 %v4620_v55, %v4619_v53 }
 0x115   :  { %v4552_v58 = vpop.f32.mrb[16].mxu0  ;;  %v5874_v59 = vadd.f32 %v4621_v57, %v799_v54 }
 0x116   :  { %v4553_v60 = vpop.f32.mrb[17].mxu0 }
 0x117   :  { %v4554_v61 = vadd.f32 %v4553_v60, %v4552_v58  ;;  %v4555_v62 = vpop.f32.mrb[18].mxu0  ;;  %v4622_v63 = vpop.f32.mrb[16].mxu1 }
 0x118   :  { %v4556_v0 = vpop.f32.mrb[19].mxu0  ;;  %v4623_v5 = vpop.f32.mrb[17].mxu1 }
 0x119   :  { %v804_v2 = vadd.f32 %v4554_v61, %v5826_v50  ;;  %v4557_v3 = vadd.f32 %v4556_v0, %v4555_v62  ;;  %v4624_v6 = vadd.f32 %v4623_v5, %v4622_v63  ;;  %v4625_v7 = vpop.f32.mrb[18].mxu1 }
 0x11a   :  { %v4626_v9 = vpop.f32.mrb[19].mxu1 }
 0x11b   :  { %v807_v8 = vadd.f32 %v4557_v3, %v5826_v50  ;;  %v5878_v10 = vadd.f32 %v4624_v6, %v804_v2  ;;  %v4627_v11 = vadd.f32 %v4626_v9, %v4625_v7 }
 0x11d   :  { %v4558_v12 = vpop.f32.mrb[20].mxu0  ;;  %v5880_v13 = vadd.f32 %v4627_v11, %v807_v8 }
 0x11e   :  { %v4559_v14 = vpop.f32.mrb[21].mxu0 }
 0x11f   :  { %v4560_v15 = vadd.f32 %v4559_v14, %v4558_v12  ;;  %v4561_v16 = vpop.f32.mrb[22].mxu0  ;;  %v4628_v18 = vpop.f32.mrb[20].mxu1 }
 0x120   :  { %v4562_v19 = vpop.f32.mrb[23].mxu0  ;;  %v4629_v23 = vpop.f32.mrb[21].mxu1 }
 0x121   :  { %v812_v21 = vadd.f32 %v4560_v15, %v5826_v50  ;;  %v4563_v22 = vadd.f32 %v4562_v19, %v4561_v16  ;;  %v4630_v24 = vadd.f32 %v4629_v23, %v4628_v18  ;;  %v4631_v25 = vpop.f32.mrb[22].mxu1 }
 0x122   :  { %v4632_v27 = vpop.f32.mrb[23].mxu1 }
 0x123   :  { %v815_v26 = vadd.f32 %v4563_v22, %v5826_v50  ;;  %v5884_v28 = vadd.f32 %v4630_v24, %v812_v21  ;;  %v4633_v29 = vadd.f32 %v4632_v27, %v4631_v25 }
 0x125   :  { %v4564_v30 = vpop.f32.mrb[24].mxu0  ;;  %v5886_v31 = vadd.f32 %v4633_v29, %v815_v26 }
 0x126   :  { %v4565_v32 = vpop.f32.mrb[25].mxu0 }
 0x127   :  { %v4566_v33 = vadd.f32 %v4565_v32, %v4564_v30  ;;  %v4567_v34 = vpop.f32.mrb[26].mxu0  ;;  %v4634_v35 = vpop.f32.mrb[24].mxu1 }
 0x128   :  { %v4568_v36 = vpop.f32.mrb[27].mxu0  ;;  %v4635_v40 = vpop.f32.mrb[25].mxu1 }
 0x129   :  { %v820_v37 = vadd.f32 %v4566_v33, %v5826_v50  ;;  %v4569_v39 = vadd.f32 %v4568_v36, %v4567_v34  ;;  %v4636_v42 = vadd.f32 %v4635_v40, %v4634_v35  ;;  %v4637_v43 = vpop.f32.mrb[26].mxu1 }
 0x12a   :  { %v4638_v45 = vpop.f32.mrb[27].mxu1 }
 0x12b   :  { %v823_v44 = vadd.f32 %v4569_v39, %v5826_v50  ;;  %v5890_v46 = vadd.f32 %v4636_v42, %v820_v37  ;;  %v4639_v47 = vadd.f32 %v4638_v45, %v4637_v43 }
 0x12d   :  { %v4570_v48 = vpop.f32.mrb[28].mxu0  ;;  %v5892_v49 = vadd.f32 %v4639_v47, %v823_v44 }
 0x12e   :  { %v4571_v51 = vpop.f32.mrb[29].mxu0 }
 0x12f   :  { %v4572_v52 = vadd.f32 %v4571_v51, %v4570_v48  ;;  %v4573_v53 = vpop.f32.mrb[30].mxu0  ;;  %v4640_v54 = vpop.f32.mrb[28].mxu1 }
 0x130   :  { %v4574_v55 = vpop.f32.mrb[31].mxu0  ;;  %v4641_v60 = vpop.f32.mrb[29].mxu1 }
 0x131   :  { %v828_v57 = vadd.f32 %v4572_v52, %v5826_v50  ;;  %v4575_v58 = vadd.f32 %v4574_v55, %v4573_v53  ;;  %v4642_v61 = vadd.f32 %v4641_v60, %v4640_v54  ;;  %v4643_v62 = vpop.f32.mrb[30].mxu1 }
 0x132   :  { %v4644_v0 = vpop.f32.mrb[31].mxu1 }
 0x133   :  { %v831_v63 = vadd.f32 %v4575_v58, %v5826_v50  ;;  %v5896_v2 = vadd.f32 %v4642_v61, %v828_v57  ;;  %v4645_v3 = vadd.f32 %v4644_v0, %v4643_v62 }
 0x135   :  { %v4576_v5 = vpop.f32.mrb[32].mxu0  ;;  %v5898_v6 = vadd.f32 %v4645_v3, %v831_v63 }
 0x136   :  { %v4577_v7 = vpop.f32.mrb[33].mxu0 }
 0x137   :  { %v4578_v8 = vadd.f32 %v4577_v7, %v4576_v5  ;;  %v4579_v9 = vpop.f32.mrb[34].mxu0  ;;  %v4646_v11 = vpop.f32.mrb[32].mxu1 }
 0x138   :  { %v4580_v12 = vpop.f32.mrb[35].mxu0  ;;  %v4647_v15 = vpop.f32.mrb[33].mxu1 }
 0x139   :  { %v836_v14 = vadd.f32 %v4578_v8, %v5826_v50  ;;  %v4648_v16 = vadd.f32 %v4647_v15, %v4646_v11  ;;  %v4649_v18 = vpop.f32.mrb[34].mxu1 }
 0x13a   :  { %v4650_v19 = vpop.f32.mrb[35].mxu1 }
 0x13b   :  { %v5901_v21 = vadd.f32 %v4648_v16, %v836_v14 }
 0x13d   :  { %v4668_v22 = vpop.f32.mrb[36].mxu0 }
 0x13e   :  { %v4669_v23 = vpop.f32.mrb[37].mxu0 }
 0x13f   :  { %v4670_v24 = vadd.f32 %v4669_v23, %v4668_v22  ;;  %v4671_v25 = vpop.f32.mrb[38].mxu0 }
 0x140   :  { %v4672_v26 = vpop.f32.mrb[39].mxu0 }
 0x141   :  { %v980_v27 = vadd.f32 %v4670_v24, %v5836_v1  ;;  %v4673_v29 = vadd.f32 %v4672_v26, %v4671_v25 }
 0x143   :  { %v983_v30 = vadd.f32 %v4673_v29, %v5838_v4  ;;  %v1049_v32 = vmax.f32 %v980_v27, 0.0 }
 0x145   :  { %v1050_v33 = vmax.f32 %v983_v30, 0.0  ;;  %v4674_v34 = vpop.f32.mrb[40].mxu0 }
 0x146   :  { %v4675_v50 = vpop.f32.mrb[41].mxu0 }
 0x147   :  { %v4468_v35 = vpack.c.bf16 %v1050_v33, %v1049_v32  ;;  %v4676_v36 = vadd.f32 %v4675_v50, %v4674_v34  ;;  %v4677_v37 = vpop.f32.mrb[42].mxu0 }
 0x148   :  { %v4678_v39 = vpop.f32.mrb[43].mxu0 }
 0x149   :  { %4469 = vst [vmem:[#allocation2] sm:$0xff] %v4468_v35   ;;  %v988_v40 = vadd.f32 %v4676_v36, %v5842_v17  ;;  %v4679_v42 = vadd.f32 %v4678_v39, %v4677_v37 }
 0x14b   :  { %v991_v43 = vadd.f32 %v4679_v42, %v5844_v20  ;;  %v1051_v44 = vmax.f32 %v988_v40, 0.0 }
 0x14d   :  { %v1052_v45 = vmax.f32 %v991_v43, 0.0  ;;  %v4680_v1 = vpop.f32.mrb[44].mxu0 }
 0x14e   :  { %v4681_v47 = vpop.f32.mrb[45].mxu0 }
 0x14f   :  { %v4473_v48 = vpack.c.bf16 %v1052_v45, %v1051_v44  ;;  %v4682_v4 = vadd.f32 %v4681_v47, %v4680_v1  ;;  %v4683_v51 = vpop.f32.mrb[46].mxu0 }
 0x150   :  { %v4684_v52 = vpop.f32.mrb[47].mxu0 }
 0x151   :  { %4505 = vst [vmem:[#allocation2 + $0x8] sm:$0xff] %v4473_v48   ;;  %v996_v53 = vadd.f32 %v4682_v4, %v5863_v38  ;;  %v4685_v54 = vadd.f32 %v4684_v52, %v4683_v51 }
 0x153   :  { %v999_v55 = vadd.f32 %v4685_v54, %v5865_v41  ;;  %v1053_v57 = vmax.f32 %v996_v53, 0.0 }
 0x155   :  { %v1054_v58 = vmax.f32 %v999_v55, 0.0  ;;  %v4686_v17 = vpop.f32.mrb[48].mxu0 }
 0x156   :  { %v4687_v60 = vpop.f32.mrb[49].mxu0 }
 0x157   :  { %v4478_v61 = vpack.c.bf16 %v1054_v58, %v1053_v57  ;;  %v4688_v20 = vadd.f32 %v4687_v60, %v4686_v17  ;;  %v4689_v62 = vpop.f32.mrb[50].mxu0 }
 0x158   :  { %v4690_v63 = vpop.f32.mrb[51].mxu0 }
 0x159   :  { %4506 = vst [vmem:[#allocation2 + $0x10] sm:$0xff] %v4478_v61   ;;  %v1004_v0 = vadd.f32 %v4688_v20, %v5872_v56  ;;  %v4691_v3 = vadd.f32 %v4690_v63, %v4689_v62 }
 0x15b   :  { %v1007_v5 = vadd.f32 %v4691_v3, %v5874_v59  ;;  %v1055_v7 = vmax.f32 %v1004_v0, 0.0 }
 0x15d   :  { %v1056_v8 = vmax.f32 %v1007_v5, 0.0  ;;  %v4692_v38 = vpop.f32.mrb[52].mxu0 }
 0x15e   :  { %v4693_v9 = vpop.f32.mrb[53].mxu0 }
 0x15f   :  { %v4483_v11 = vpack.c.bf16 %v1056_v8, %v1055_v7  ;;  %v4694_v41 = vadd.f32 %v4693_v9, %v4692_v38  ;;  %v4695_v12 = vpop.f32.mrb[54].mxu0  ;;  %v4989_v8 = vld [vmem:[%s6932_s5 + $0x2c] ss:$16 sps:$4 sm:$0xff]  }
 0x160   :  { %v4696_v14 = vpop.f32.mrb[55].mxu0  ;;  %v1158_v0 = vld [vmem:[#allocation2 + $0x14] sm:$0xf] }
 0x161   :  { %4507 = vst [vmem:[#allocation2 + $0x18] sm:$0xff] %v4483_v11   ;;  %v1012_v15 = vadd.f32 %v4694_v41, %v5878_v10  ;;  %v4697_v16 = vadd.f32 %v4696_v14, %v4695_v12  ;;  %v1157_v41 = vld [vmem:[#allocation2 + $0x10] sm:$0xe]  ;;  %v1172_v12 = vrot.slane %v1158_v0, 5  ;;  %v4981_v0 = vld [vmem:[%s6932_s5 + $0x8] ss:$16 sps:$4 sm:$0xff]  }
 0x163   :  { %v1015_v18 = vadd.f32 %v4697_v16, %v5880_v13  ;;  %v1057_v19 = vmax.f32 %v1012_v15, 0.0 }
 0x165   :  { %v1058_v22 = vmax.f32 %v1015_v18, 0.0  ;;  %v4698_v56 = vpop.f32.mrb[56].mxu0 }
 0x166   :  { %v4699_v23 = vpop.f32.mrb[57].mxu0 }
 0x167   :  { %v4488_v24 = vpack.c.bf16 %v1058_v22, %v1057_v19  ;;  %v4700_v59 = vadd.f32 %v4699_v23, %v4698_v56  ;;  %v4701_v25 = vpop.f32.mrb[58].mxu0  ;;  %v4116_v22 = vrot.slane %v1157_v41, 9  ;;  %v4998_v41 = vld [vmem:[%s6932_s5 + $0x44] ss:$16 sps:$4 sm:$0xff]  }
 0x168   :  { %v4702_v26 = vpop.f32.mrb[59].mxu0  ;;  %v1159_v38 = vld [vmem:[#allocation2 + $0x18] sm:$0xf] }
 0x169   :  { %4508 = vst [vmem:[#allocation2 + $0x20] sm:$0xff] %v4488_v24   ;;  %v1020_v27 = vadd.f32 %v4700_v59, %v5884_v28  ;;  %v4703_v29 = vadd.f32 %v4702_v26, %v4701_v25  ;;  %v1175_v16 = vrot.slane %v1159_v38, 5  ;;  %v1174_v25 = vrot.slane %v1172_v12, 4  ;;  %v4992_v38 = vld [vmem:[%s6932_s5 + $0x24] ss:$16 sps:$4 sm:$0xff]  }
 0x16b   :  { %v1023_v30 = vadd.f32 %v4703_v29, %v5886_v31  ;;  %v1059_v32 = vmax.f32 %v1020_v27, 0.0  ;;  %v1160_v27 = vld [vmem:[#allocation2 + $0x1c] sm:$0xf] }
 0x16d   :  { %v1060_v33 = vmax.f32 %v1023_v30, 0.0  ;;  %v4704_v10 = vpop.f32.mrb[60].mxu0 }
 0x16e   :  { %v4705_v34 = vpop.f32.mrb[61].mxu0 }
 0x16f   :  { %v4493_v50 = vpack.c.bf16 %v1060_v33, %v1059_v32  ;;  %v4706_v13 = vadd.f32 %v4705_v34, %v4704_v10  ;;  %v4707_v35 = vpop.f32.mrb[62].mxu0  ;;  %v1176_v33 = vsel %vm5920_vm2, %v1174_v25, %v1175_v16  ;;  %v5016_v25 = vld [vmem:[%s6932_s5 + $0xa4] ss:$16 sps:$4 sm:$0xff]  }
 0x170   :  { %v4708_v36 = vpop.f32.mrb[63].mxu0  ;;  %v1195_v14 = vld [vmem:[#allocation2 + $0x24] sm:$0xf]  ;;  %v1194_v56 = vld [vmem:[#allocation2 + $0x20] sm:$0xc] }
 0x171   :  { %4509 = vst [vmem:[#allocation2 + $0x28] sm:$0xff] %v4493_v50   ;;  %v1028_v37 = vadd.f32 %v4706_v13, %v5890_v46  ;;  %v4709_v39 = vadd.f32 %v4708_v36, %v4707_v35  ;;  %v1161_v36 = vld [vmem:[#allocation2 + $0x20] sm:$0x3] }
 0x173   :  { %v1031_v40 = vadd.f32 %v4709_v39, %v5892_v49  ;;  %v1061_v42 = vmax.f32 %v1028_v37, 0.0  ;;  %v1153_v37 = vld [vmem:[#allocation2 + $0x4] sm:$0xf]  ;;  %v1173_v39 = vsel %vm5920_vm2, %v4116_v22, %v1172_v12  ;;  %v4993_v12 = vld [vmem:[%s6932_s5 + $0x48] ss:$16 sps:$4 sm:$0xff]  }
 0x174   :  { %v5007_v22 = vld [vmem:[%s6932_s5 + $0x8c] ss:$16 sps:$4 sm:$0xff]  }
 0x175   :  { %v1062_v43 = vmax.f32 %v1031_v40, 0.0  ;;  %v4710_v28 = vpop.f32.mrb[64].mxu0 }
 0x176   :  { %v4711_v44 = vpop.f32.mrb[65].mxu0 }
 0x177   :  { %v4498_v45 = vpack.c.bf16 %v1062_v43, %v1061_v42  ;;  %v4712_v31 = vadd.f32 %v4711_v44, %v4710_v28  ;;  %v4713_v1 = vpop.f32.mrb[66].mxu0  ;;  %v1178_v42 = vrot.slane %v1160_v27, 5  ;;  %v1190_v28 = vmax.bf16 %v1176_v33, %v1153_v37  ;;  %v1152_v44 = vld [vmem:[#allocation2] sm:$0xf]  ;;  %v5029_v37 = vld [vmem:[%s6932_s5 + $0x108] ss:$16 sps:$4 sm:$0xff]  }
 0x178   :  { %v4714_v47 = vpop.f32.mrb[67].mxu0  ;;  %v1196_v29 = vld [vmem:[#allocation2 + $0x28] sm:$0xf]  ;;  %v1197_v30 = vld [vmem:[#allocation2 + $0x2c] sm:$0xf] }
 0x179   :  { %4510 = vst [vmem:[#allocation2 + $0x30] sm:$0xff] %v4498_v45   ;;  %v1036_v48 = vadd.f32 %v4712_v31, %v5896_v2  ;;  %v4715_v4 = vadd.f32 %v4714_v47, %v4713_v1  ;;  %v1181_v31 = vrot.slane %v1161_v36, 5  ;;  %v5014_v27 = vld [vmem:[%s6932_s5 + $0xa0] ss:$16 sps:$4 sm:$0xff]   ;;  %v5034_v36 = vld [vmem:[%s6932_s5 + $0x104] ss:$16 sps:$4 sm:$0xff]  }
 0x17a   :  { %v5020_v33 = vld [vmem:[%s6932_s5 + $0xc0] ss:$16 sps:$4 sm:$0xff]  }
 0x17b   :  { %v1039_v51 = vadd.f32 %v4715_v4, %v5898_v6  ;;  %v1063_v52 = vmax.f32 %v1036_v48, 0.0  ;;  %v1189_v48 = vmax.bf16 %v1173_v39, %v1152_v44  ;;  %v5032_v39 = vld [vmem:[%s6932_s5 + $0x100] ss:$16 sps:$4 sm:$0xff]   ;;  %v5046_v44 = vld [vmem:[%s6932_s5 + $0x14c] ss:$16 sps:$4 sm:$0xff]  }
 0x17d   :  { %v1064_v53 = vmax.f32 %v1039_v51, 0.0  ;;  %v4716_v46 = vpop.f32.mrb[68].mxu0  ;;  %v1177_v51 = vrot.slane %v1175_v16, 4  ;;  %v5004_v16 = vld [vmem:[%s6932_s5 + $0x64] ss:$16 sps:$4 sm:$0xff]  }
 0x17e   :  { %v4717_v54 = vpop.f32.mrb[69].mxu0 }
 0x17f   :  { %v4503_v55 = vpack.c.bf16 %v1064_v53, %v1063_v52  ;;  %v4718_v49 = vadd.f32 %v4717_v54, %v4716_v46  ;;  %v4719_v57 = vpop.f32.mrb[70].mxu0  ;;  %v1180_v52 = vrot.slane %v1178_v42, 4  ;;  %v4121_v46 = vcombine.low %v1189_v48, %v1190_v28  ;;  %v5035_v28 = vld [vmem:[%s6932_s5 + $0x120] ss:$16 sps:$4 sm:$0xff]   ;;  %v5049_v48 = vld [vmem:[%s6932_s5 + $0x164] ss:$16 sps:$4 sm:$0xff]  }
 0x180   :  { %v4720_v58 = vpop.f32.mrb[71].mxu0  ;;  %v1200_v60 = vld [vmem:[#allocation2 + $0x34] sm:$0xf]  ;;  %v1199_v63 = vld [vmem:[#allocation2 + $0x30] sm:$0x8]  ;;  %v1179_v57 = vsel %vm5920_vm2, %v1177_v51, %v1178_v42 }
 0x181   :  { %4511 = vst [vmem:[#allocation2 + $0x38] sm:$0xff] %v4503_v55   ;;  %v1044_v17 = vadd.f32 %v4718_v49, %v5901_v21  ;;  %v1211_v62 = vrot.slane %v1200_v60, 5  ;;  %v4117_v3 = vrot.slane %v1199_v63, 9  ;;  %v1198_v35 = vld [vmem:[#allocation2 + $0x30] sm:$0x3]  ;;  %v1182_v55 = vsel %vm5920_vm2, %v1180_v52, %v1181_v31 }
 0x182   :  { %v1155_v49 = vld [vmem:[#allocation2 + $0xc] sm:$0xf]  ;;  %v1156_v63 = vld [vmem:[#allocation2 + $0x10] sm:$0x1]  ;;  %v5037_v42 = vld [vmem:[%s6932_s5 + $0x124] ss:$16 sps:$4 sm:$0xff]  }
 0x183   :  { %v1065_v61 = vmax.f32 %v1044_v17, 0.0  ;;  %v1213_v5 = vrot.slane %v1211_v62, 4  ;;  %v1212_v15 = vsel %vm5920_vm2, %v4117_v3, %v1211_v62  ;;  %v1192_v58 = vmax.bf16 %v1182_v55, %v1155_v49  ;;  %v1154_v17 = vld [vmem:[#allocation2 + $0x8] sm:$0xf]  ;;  %v4983_v3 = vld [vmem:[%s6932_s5 + $0xc] ss:$16 sps:$4 sm:$0xff]  }
 0x184   :  { %v1228_v26 = vmax.bf16 %v1212_v15, %v1194_v56  ;;  %v1191_v60 = vmax.bf16 %v1179_v57, %v1154_v17  ;;  %v5449_v62 = vmov 0   ;;  %3419 = vmatprep.subr.bf16.mxu0 %v4983_v3  ;;  %v5001_v15 = vld [vmem:[%s6932_s5 + $0x6c] ss:$16 sps:$4 sm:$0xff]   ;;  %v5010_v56 = vld [vmem:[%s6932_s5 + $0x84] ss:$16 sps:$4 sm:$0xff]  }
 0x185   :  { %v4464_v20 = vpack.c.bf16 %v1065_v61, %v1065_v61  ;;  %3420 = vmatpush1.bf16.msra.mxu0 %v4981_v0  ;;  %v5047_v51 = vld [vmem:[%s6932_s5 + $0x160] ss:$16 sps:$4 sm:$0xff]   ;;  %v5058_v52 = vld [vmem:[%s6932_s5 + $0x18c] ss:$16 sps:$4 sm:$0xff]   ;;  %v5061_v49 = vld [vmem:[%s6932_s5 + $0x1a4] ss:$16 sps:$4 sm:$0xff]  }
 0x186   :  { %v4122_v61 = vcombine.low %v1191_v60, %v1192_v58  ;;  %3421 = vmatprep.subr.bf16.mxu0 %v4989_v8  ;;  %v5064_v55 = vld [vmem:[%s6932_s5 + $0x1ac] ss:$16 sps:$4 sm:$0xff]   ;;  %v5062_v57 = vld [vmem:[%s6932_s5 + $0x1a8] ss:$16 sps:$4 sm:$0xff]   ;;  %v5059_v58 = vld [vmem:[%s6932_s5 + $0x1a0] ss:$16 sps:$4 sm:$0xff]  }
 0x187   :  { %1151 = vst [vmem:[#allocation2 + $0x40] sm:$0xf] %v4464_v20  ;;  %v1183_v20 = vrot.slane %v1181_v31, 4  ;;  %v5044_v31 = vld [vmem:[%s6932_s5 + $0x148] ss:$16 sps:$4 sm:$0xff]  }
 0x188   :  { %v1201_v2 = vld [vmem:[#allocation2 + $0x38] sm:$0xf]  ;;  %v1202_v6 = vld [vmem:[#allocation2 + $0x3c] sm:$0xf]  ;;  %v5067_v60 = vld [vmem:[%s6932_s5 + $0x1c4] ss:$16 sps:$4 sm:$0xff]  }
 0x189   :  { %v1214_v7 = vrot.slane %v1201_v2, 5  ;;  %v1217_v11 = vrot.slane %v1202_v6, 5  ;;  %v1193_v2 = vmax.bf16 %v1183_v20, %v1156_v63  ;;  %v5070_v17 = vld [vmem:[%s6932_s5 + $0x1cc] ss:$16 sps:$4 sm:$0xff]   ;;  %v5065_v20 = vld [vmem:[%s6932_s5 + $0x1c0] ss:$16 sps:$4 sm:$0xff]   ;;  %v1304_v63 = vlaneseq }
 0x18b   :  { %v1215_v21 = vsel %vm5920_vm2, %v1213_v5, %v1214_v7  ;;  %v1216_v9 = vrot.slane %v1214_v7, 4  ;;  %v1219_v24 = vrot.slane %v1217_v11, 4  ;;  %v4123_v6 = vcombine.low %v1193_v2, %v1193_v2  ;;  %v4984_v5 = vld [vmem:[%s6932_s5] ss:$16 sps:$4 sm:$0xff]   ;;  %v4986_v7 = vld [vmem:[%s6932_s5 + $0x4] ss:$16 sps:$4 sm:$0xff]  }
 0x18c   :  { %v1229_v19 = vmax.bf16 %v1215_v21, %v1195_v14  ;;  %3214 = vmatprep.subr.bf16.mxu1 %v4986_v7  ;;  %v4987_v21 = vld [vmem:[%s6932_s5 + $0x28] ss:$16 sps:$4 sm:$0xff]   ;;  %v4996_v14 = vld [vmem:[%s6932_s5 + $0x40] ss:$16 sps:$4 sm:$0xff]   ;;  %v6121_v2 = vshrl.u32 %v1304_v63, 7 }
 0x18d   :  { %v1218_v23 = vsel %vm5920_vm2, %v1216_v9, %v1217_v11  ;;  %v4990_v9 = vld [vmem:[%s6932_s5 + $0x20] ss:$16 sps:$4 sm:$0xff]   ;;  %v4995_v11 = vld [vmem:[%s6932_s5 + $0x4c] ss:$16 sps:$4 sm:$0xff]   ;;  %3422 = vmatpush1.bf16.msra.mxu0 %v4987_v21  ;;  %v5080_v63 = vld [vmem:[%s6932_s5 + $0x208] ss:$16 sps:$4 sm:$0xff]  }
 0x18e   :  { %v1203_v18 = vld [vmem:[#allocation2 + $0x40] sm:$0x7]  ;;  %v1230_v34 = vmax.bf16 %v1218_v23, %v1196_v29  ;;  %v4118_v13 = vcombine.low %v1228_v26, %v1229_v19  ;;  %3423 = vmatprep.subr.bf16.mxu0 %v4995_v11  ;;  %v5005_v23 = vld [vmem:[%s6932_s5 + $0x88] ss:$16 sps:$4 sm:$0xff]   ;;  %v5019_v29 = vld [vmem:[%s6932_s5 + $0xcc] ss:$16 sps:$4 sm:$0xff]  }
 0x18f   :  { %v1220_v59 = vrot.slane %v1203_v18, 5  ;;  %v4999_v18 = vld [vmem:[%s6932_s5 + $0x68] ss:$16 sps:$4 sm:$0xff]   ;;  %v5002_v19 = vld [vmem:[%s6932_s5 + $0x60] ss:$16 sps:$4 sm:$0xff]   ;;  %v6127_v0 = vsub.s32 0, %v6121_v2 }
 0x190   :  { %v1247_v1 = vrot.slane %v4118_v13, 2  ;;  %v5011_v26 = vld [vmem:[%s6932_s5 + $0xa8] ss:$16 sps:$4 sm:$0xff]   ;;  %v5026_v13 = vld [vmem:[%s6932_s5 + $0xe0] ss:$16 sps:$4 sm:$0xff]  }
 0x191   :  { %v1221_v32 = vsel %vm5920_vm2, %v1219_v24, %v1220_v59  ;;  %v1222_v10 = vrot.slane %v1220_v59, 4  ;;  %3424 = vmatpush1.bf16.msra.mxu0 %v4993_v12  ;;  %v5008_v24 = vld [vmem:[%s6932_s5 + $0x80] ss:$16 sps:$4 sm:$0xff]   ;;  %v5013_v59 = vld [vmem:[%s6932_s5 + $0xac] ss:$16 sps:$4 sm:$0xff]  }
 0x192   :  { %v1231_v50 = vmax.bf16 %v1221_v32, %v1197_v30  ;;  %3425 = vmatprep.subr.bf16.mxu0 %v5001_v15  ;;  %v5022_v30 = vld [vmem:[%s6932_s5 + $0xc4] ss:$16 sps:$4 sm:$0xff]   ;;  %v5017_v32 = vld [vmem:[%s6932_s5 + $0xc8] ss:$16 sps:$4 sm:$0xff]  }
 0x193   :  { %v1232_v40 = vmax.bf16 %v1222_v10, %v1198_v35  ;;  %v5025_v10 = vld [vmem:[%s6932_s5 + $0xec] ss:$16 sps:$4 sm:$0xff]  }
 0x194   :  { %v4119_v43 = vcombine.low %v1230_v34, %v1231_v50  ;;  %v5028_v34 = vld [vmem:[%s6932_s5 + $0xe4] ss:$16 sps:$4 sm:$0xff]   ;;  %v5023_v50 = vld [vmem:[%s6932_s5 + $0xe8] ss:$16 sps:$4 sm:$0xff]   ;;  %v5031_v35 = vld [vmem:[%s6932_s5 + $0x10c] ss:$16 sps:$4 sm:$0xff]  }
 0x195   :  { %v4120_v45 = vcombine.low %v1232_v40, %v1232_v40  ;;  %3426 = vmatpush1.bf16.msra.mxu0 %v4999_v18  ;;  %v5040_v40 = vld [vmem:[%s6932_s5 + $0x12c] ss:$16 sps:$4 sm:$0xff]  }
 0x196   :  { %v1248_v47 = vrot.slane %v4119_v43, 2  ;;  %3427 = vmatprep.subr.bf16.mxu0 %v5007_v22  ;;  %v5038_v43 = vld [vmem:[%s6932_s5 + $0x128] ss:$16 sps:$4 sm:$0xff]  }
 0x197   :  { %v1250_v4 = vrot.slane %v4120_v45, 2  ;;  %v5043_v45 = vld [vmem:[%s6932_s5 + $0x144] ss:$16 sps:$4 sm:$0xff]  }
 0x198   :  { %v1249_v53 = vsel %vm1246_vm3, %v1247_v1, %v1248_v47  ;;  %v5041_v1 = vld [vmem:[%s6932_s5 + $0x140] ss:$16 sps:$4 sm:$0xff]  }
 0x199   :  { %1437 = vmatprep.mubr.bf16.mxu1 %v1249_v53  ;;  %v1251_v54 = vsel %vm1246_vm3, %v1248_v47, %v1250_v4  ;;  %3428 = vmatpush1.bf16.msra.mxu0 %v5005_v23  ;;  %v5052_v47 = vld [vmem:[%s6932_s5 + $0x16c] ss:$16 sps:$4 sm:$0xff]   ;;  %v5050_v4 = vld [vmem:[%s6932_s5 + $0x168] ss:$16 sps:$4 sm:$0xff]   ;;  %v5055_v53 = vld [vmem:[%s6932_s5 + $0x184] ss:$16 sps:$4 sm:$0xff]  }
 0x19a   :  { %1438 = vmatmul.mubr.bf16.vlgmr.msra.gmra.mrb[36].mxu1 %v4121_v46  ;;  %3429 = vmatprep.subr.bf16.mxu0 %v5013_v59  ;;  %v5056_v46 = vld [vmem:[%s6932_s5 + $0x188] ss:$16 sps:$4 sm:$0xff]  }
 0x19b   :  { %1445 = vmatprep.mubr.bf16.mxu1 %v1251_v54  ;;  %3215 = vmatpush1.bf16.msra.mxu1 %v4984_v5  ;;  %v5053_v54 = vld [vmem:[%s6932_s5 + $0x180] ss:$16 sps:$4 sm:$0xff]  }
 0x19c   :  { %3216 = vmatprep.subr.bf16.mxu1 %v4992_v38 }
 0x19d   :  { %3430 = vmatpush1.bf16.msra.mxu0 %v5011_v26 }
 0x19e   :  { %3431 = vmatprep.subr.bf16.mxu0 %v5019_v29 }
 0x19f   :  { %3217 = vmatpush1.bf16.msra.mxu1 %v4990_v9 }
 0x1a0   :  { %3218 = vmatprep.subr.bf16.mxu1 %v4998_v41 }
 0x1a1   :  { %3432 = vmatpush1.bf16.msra.mxu0 %v5017_v32  ;;  %v5073_v32 = vld [vmem:[%s6932_s5 + $0x1e4] ss:$16 sps:$4 sm:$0xff]  }
 0x1a2   :  { %1446 = vmatmul.mubr.bf16.gmra.mrb[40].mxu1 %v4122_v61  ;;  %3433 = vmatprep.subr.bf16.mxu0 %v5025_v10  ;;  %v5068_v61 = vld [vmem:[%s6932_s5 + $0x1c8] ss:$16 sps:$4 sm:$0xff]  }
 0x1a3   :  { %1453 = vmatprep.mubr.bf16.mxu1 %v5449_v62  ;;  %3219 = vmatpush1.bf16.msra.mxu1 %v4996_v14 }
 0x1a4   :  { %3220 = vmatprep.subr.bf16.mxu1 %v5004_v16 }
 0x1a5   :  { %3434 = vmatpush1.bf16.msra.mxu0 %v5023_v50 }
 0x1a6   :  { %3435 = vmatprep.subr.bf16.mxu0 %v5031_v35 }
 0x1a7   :  { %3221 = vmatpush1.bf16.msra.mxu1 %v5002_v19 }
 0x1a8   :  { %3222 = vmatprep.subr.bf16.mxu1 %v5010_v56 }
 0x1a9   :  { %3436 = vmatpush1.bf16.msra.mxu0 %v5029_v37  ;;  %v5079_v37 = vld [vmem:[%s6932_s5 + $0x204] ss:$16 sps:$4 sm:$0xff]  }
 0x1aa   :  { %1454 = vmatmul.mubr.bf16.gmra.mrb[44].mxu1 %v4123_v6  ;;  %3437 = vmatprep.subr.bf16.mxu0 %v5040_v40  ;;  %v1302_v6 = vld [vmem:[%s6931_s4] sm:$0x1] }
 0x1ab   :  { %3223 = vmatpush1.bf16.msra.mxu1 %v5008_v24  ;;  %v1469_v3 = vmax.f32 %v1302_v6, 0.0  ;;  %v1307_v7 = vrot.slane %v1302_v6, %v6127_v0 }
 0x1ac   :  { %3224 = vmatprep.subr.bf16.mxu1 %v5016_v25 }
 0x1ad   :  { %3438 = vmatpush1.bf16.msra.mxu0 %v5038_v43  ;;  %v1470_v8 = vpack.c.bf16 %v1469_v3, %v1469_v3 }
 0x1ae   :  { %3439 = vmatprep.subr.bf16.mxu0 %v5046_v44 }
 0x1af   :  { %3225 = vmatpush1.bf16.msra.mxu1 %v5014_v27  ;;  %v1472_v14 = vpack.i.b16 %v1470_v8, %v1470_v8  ;;  %v5085_v8 = vld [vmem:[%s6932_s5 + $0x224] ss:$16 sps:$4 sm:$0xff]  }
 0x1b0   :  { %3226 = vmatprep.subr.bf16.mxu1 %v5022_v30  ;;  %v5071_v30 = vld [vmem:[%s6932_s5 + $0x1e0] ss:$16 sps:$4 sm:$0xff]  }
 0x1b1   :  { %3440 = vmatpush1.bf16.msra.mxu0 %v5044_v31  ;;  %v6131_v22 = vrot.slane %v1472_v14, %v6127_v0  ;;  %v5089_v14 = vld [vmem:[%s6932_s5 + $0x240] ss:$16 sps:$4 sm:$0xff]  }
 0x1b2   :  { %3441 = vmatprep.subr.bf16.mxu0 %v5052_v47 }
 0x1b3   :  { %3227 = vmatpush1.bf16.msra.mxu1 %v5020_v33  ;;  %v5074_v33 = vld [vmem:[%s6932_s5 + $0x1e8] ss:$16 sps:$4 sm:$0xff]  }
 0x1b4   :  { %3228 = vmatprep.subr.bf16.mxu1 %v5028_v34  ;;  %v5076_v34 = vld [vmem:[%s6932_s5 + $0x1ec] ss:$16 sps:$4 sm:$0xff]  }
 0x1b5   :  { %3442 = vmatpush1.bf16.msra.mxu0 %v5050_v4 }
 0x1b6   :  { %3443 = vmatprep.subr.bf16.mxu0 %v5058_v52 }
 0x1b7   :  { %3229 = vmatpush1.bf16.msra.mxu1 %v5026_v13 }
 0x1b8   :  { %3230 = vmatprep.subr.bf16.mxu1 %v5034_v36 }
 0x1b9   :  { %3444 = vmatpush1.bf16.msra.mxu0 %v5056_v46 }
 0x1ba   :  { %3445 = vmatprep.subr.bf16.mxu0 %v5064_v55 }
 0x1bb   :  { %3231 = vmatpush1.bf16.msra.mxu1 %v5032_v39  ;;  %v5082_v39 = vld [vmem:[%s6932_s5 + $0x20c] ss:$16 sps:$4 sm:$0xff]  }
 0x1bc   :  { %3232 = vmatprep.subr.bf16.mxu1 %v5037_v42 }
 0x1bd   :  { %3446 = vmatpush1.bf16.msra.mxu0 %v5062_v57 }
 0x1be   :  { %3447 = vmatprep.subr.bf16.mxu0 %v5070_v17 }
 0x1bf   :  { %3233 = vmatpush1.bf16.msra.mxu1 %v5035_v28 }
 0x1c0   :  { %3234 = vmatprep.subr.bf16.mxu1 %v5043_v45 }
 0x1c1   :  { %3448 = vmatpush1.bf16.msra.mxu0 %v5068_v61 }
 0x1c2   :  { %3449 = vmatprep.subr.bf16.mxu0 %v5076_v34  ;;  %v5121_v34 = vld [vmem:[%s6932_s5 + $0x2e4] ss:$16 sps:$4 sm:$0xff]  }
 0x1c3   :  { %3235 = vmatpush1.bf16.msra.mxu1 %v5041_v1 }
 0x1c4   :  { %3236 = vmatprep.subr.bf16.mxu1 %v5049_v48 }
 0x1c5   :  { %3450 = vmatpush1.bf16.msra.mxu0 %v5074_v33  ;;  %v5113_v33 = vld [vmem:[%s6932_s5 + $0x2c0] ss:$16 sps:$4 sm:$0xff]  }
 0x1c6   :  { %3460 = vmatprep.subr.bf16.mxu0 %v5082_v39  ;;  %v5125_v39 = vld [vmem:[%s6932_s5 + $0x300] ss:$16 sps:$4 sm:$0xff]  }
 0x1c7   :  { %3237 = vmatpush1.bf16.msra.mxu1 %v5047_v51 }
 0x1c8   :  { %3238 = vmatprep.subr.bf16.mxu1 %v5055_v53 }
 0x1cb   :  { %3239 = vmatpush1.bf16.msra.mxu1 %v5053_v54 }
 0x1cc   :  { %3240 = vmatprep.subr.bf16.mxu1 %v5061_v49 }
 0x1cf   :  { %3241 = vmatpush1.bf16.msra.mxu1 %v5059_v58 }
 0x1d0   :  { %3242 = vmatprep.subr.bf16.mxu1 %v5067_v60 }
 0x1d3   :  { %3243 = vmatpush1.bf16.msra.mxu1 %v5065_v20  ;;  %v5077_v20 = vld [vmem:[%s6932_s5 + $0x200] ss:$16 sps:$4 sm:$0xff]  }
 0x1d4   :  { %3244 = vmatprep.subr.bf16.mxu1 %v5073_v32  ;;  %v5118_v32 = vld [vmem:[%s6932_s5 + $0x2cc] ss:$16 sps:$4 sm:$0xff]  }
 0x1d7   :  { %3245 = vmatpush1.bf16.msra.mxu1 %v5071_v30  ;;  %v5115_v30 = vld [vmem:[%s6932_s5 + $0x2c4] ss:$16 sps:$4 sm:$0xff]  }
 0x1d8   :  { %3255 = vmatprep.subr.bf16.mxu1 %v5079_v37  ;;  %v5130_v37 = vld [vmem:[%s6932_s5 + $0x30c] ss:$16 sps:$4 sm:$0xff]  }
 0x26d   :  { %v4738_v5 = vpop.f32.mrb[36].mxu1 }
 0x26e   :  { %v4739_v38 = vpop.f32.mrb[37].mxu1 }
 0x26f   :  { %v4740_v21 = vadd.f32 %v4739_v38, %v4738_v5  ;;  %v4741_v9 = vpop.f32.mrb[38].mxu1  ;;  %v5088_v38 = vld [vmem:[%s6932_s5 + $0x22c] ss:$16 sps:$4 sm:$0xff]  }
 0x270   :  { %v4742_v11 = vpop.f32.mrb[39].mxu1 }
 0x271   :  { %v1440_v41 = vadd.f32 %v4740_v21, %v1307_v7  ;;  %v4743_v12 = vadd.f32 %v4742_v11, %v4741_v9  ;;  %v5083_v9 = vld [vmem:[%s6932_s5 + $0x220] ss:$16 sps:$4 sm:$0xff]   ;;  %v5086_v11 = vld [vmem:[%s6932_s5 + $0x228] ss:$16 sps:$4 sm:$0xff]  }
 0x273   :  { %v1443_v15 = vadd.f32 %v4743_v12, %v1307_v7  ;;  %v1461_v16 = vmax.f32 %v1440_v41, 0.0  ;;  %v5091_v41 = vld [vmem:[%s6932_s5 + $0x244] ss:$16 sps:$4 sm:$0xff]   ;;  %v5094_v12 = vld [vmem:[%s6932_s5 + $0x24c] ss:$16 sps:$4 sm:$0xff]  }
 0x275   :  { %v1462_v18 = vmax.f32 %v1443_v15, 0.0  ;;  %v4744_v19 = vpop.f32.mrb[40].mxu1  ;;  %v5092_v15 = vld [vmem:[%s6932_s5 + $0x248] ss:$16 sps:$4 sm:$0xff]  }
 0x276   :  { %v4745_v56 = vpop.f32.mrb[41].mxu1 }
 0x277   :  { %v6133_v23 = vpack.c.bf16 %v1462_v18, %v1461_v16  ;;  %v4746_v24 = vadd.f32 %v4745_v56, %v4744_v19  ;;  %v4747_v59 = vpop.f32.mrb[42].mxu1  ;;  %v5097_v16 = vld [vmem:[%s6932_s5 + $0x264] ss:$16 sps:$4 sm:$0xff]   ;;  %v5100_v18 = vld [vmem:[%s6932_s5 + $0x26c] ss:$16 sps:$4 sm:$0xff]  }
 0x278   :  { %v4748_v25 = vpop.f32.mrb[43].mxu1  ;;  %v5095_v19 = vld [vmem:[%s6932_s5 + $0x260] ss:$16 sps:$4 sm:$0xff]   ;;  %v5103_v56 = vld [vmem:[%s6932_s5 + $0x284] ss:$16 sps:$4 sm:$0xff]  }
 0x279   :  { %v1448_v26 = vadd.f32 %v4746_v24, %v1307_v7  ;;  %v4749_v27 = vadd.f32 %v4748_v25, %v4747_v59  ;;  %v1478_v29 = vmax.bf16 %v6131_v22, %v6133_v23  ;;  %v1483_v44 = vrot.slane %v6133_v23, 1  ;;  %v5098_v22 = vld [vmem:[%s6932_s5 + $0x268] ss:$16 sps:$4 sm:$0xff]   ;;  %v5101_v24 = vld [vmem:[%s6932_s5 + $0x280] ss:$16 sps:$4 sm:$0xff]  }
 0x27a   :  { %v5104_v59 = vld [vmem:[%s6932_s5 + $0x288] ss:$16 sps:$4 sm:$0xff]   ;;  %v5109_v25 = vld [vmem:[%s6932_s5 + $0x2a4] ss:$16 sps:$4 sm:$0xff]  }
 0x27b   :  { %v1451_v10 = vadd.f32 %v4749_v27, %v1307_v7  ;;  %v1463_v50 = vmax.f32 %v1448_v26, 0.0  ;;  %v5112_v26 = vld [vmem:[%s6932_s5 + $0x2ac] ss:$16 sps:$4 sm:$0xff]   ;;  %v5107_v27 = vld [vmem:[%s6932_s5 + $0x2a0] ss:$16 sps:$4 sm:$0xff]  }
 0x27d   :  { %v1464_v13 = vmax.f32 %v1451_v10, 0.0  ;;  %v4750_v35 = vpop.f32.mrb[44].mxu1  ;;  %v5116_v10 = vld [vmem:[%s6932_s5 + $0x2c8] ss:$16 sps:$4 sm:$0xff]  }
 0x27e   :  { %v4751_v36 = vpop.f32.mrb[45].mxu1 }
 0x27f   :  { %v1467_v40 = vpack.c.bf16 %v1464_v13, %v1463_v50  ;;  %v4752_v42 = vadd.f32 %v4751_v36, %v4750_v35  ;;  %v4753_v43 = vpop.f32.mrb[46].mxu1  ;;  %v5124_v50 = vld [vmem:[%s6932_s5 + $0x2ec] ss:$16 sps:$4 sm:$0xff]   ;;  %v5119_v13 = vld [vmem:[%s6932_s5 + $0x2e0] ss:$16 sps:$4 sm:$0xff]  }
 0x280   :  { %v4754_v28 = vpop.f32.mrb[47].mxu1  ;;  %v5122_v35 = vld [vmem:[%s6932_s5 + $0x2e8] ss:$16 sps:$4 sm:$0xff]   ;;  %v5127_v36 = vld [vmem:[%s6932_s5 + $0x304] ss:$16 sps:$4 sm:$0xff]  }
 0x281   :  { %v1484_v45 = vrot.slane %v1467_v40, 1  ;;  %v1456_v31 = vadd.f32 %v4752_v42, %v1307_v7  ;;  %v5133_v42 = vld [vmem:[%s6932_s5 + $0x324] ss:$16 sps:$4 sm:$0xff]   ;;  %v5136_v43 = vld [vmem:[%s6932_s5 + $0x32c] ss:$16 sps:$4 sm:$0xff]  }
 0x282   :  { %v5131_v28 = vld [vmem:[%s6932_s5 + $0x320] ss:$16 sps:$4 sm:$0xff]  }
 0x283   :  { %v1465_v1 = vmax.f32 %v1456_v31, 0.0  ;;  %v1485_v47 = vsel %vm1482_vm4, %v1483_v44, %v1484_v45  ;;  %v5134_v44 = vld [vmem:[%s6932_s5 + $0x328] ss:$16 sps:$4 sm:$0xff]   ;;  %v5142_v31 = vld [vmem:[%s6932_s5 + $0x34c] ss:$16 sps:$4 sm:$0xff]  }
 0x284   :  { %v6158_v48 = vmax.bf16 %v1485_v47, %v6133_v23  ;;  %v5106_v23 = vld [vmem:[%s6932_s5 + $0x28c] ss:$16 sps:$4 sm:$0xff]   ;;  %v5140_v47 = vld [vmem:[%s6932_s5 + $0x348] ss:$16 sps:$4 sm:$0xff]  }
 0x285   :  { %v1468_v4 = vpack.c.bf16 %v1465_v1, %v1465_v1  ;;  %v5137_v1 = vld [vmem:[%s6932_s5 + $0x340] ss:$16 sps:$4 sm:$0xff]  }
 0x286   :  { %v1504_v51 = vrot.slane %v6158_v48, 6  ;;  %v1496_v52 = vrot.slane %v6158_v48, 2  ;;  %v1500_v55 = vrot.slane %v6158_v48, 4  ;;  %v1495_v17 = vrot.slane %v6158_v48, 1 }
 0x287   :  { %v1486_v53 = vrot.slane %v1468_v4, 1  ;;  %v1503_v7 = vrot.slane %v6158_v48, 5  ;;  %v5145_v4 = vld [vmem:[%s6932_s5 + $0x364] ss:$16 sps:$4 sm:$0xff]  }
 0x288   :  { %1505 = vrot.lane.b32.xlu1 %v1504_v51, %s5450_s1  ;;  %1497 = vrot.lane.b32.xlu0 %v1496_v52, %s5450_s1  ;;  %v5148_v51 = vld [vmem:[%s6932_s5 + $0x36c] ss:$16 sps:$4 sm:$0xff]   ;;  %v5143_v52 = vld [vmem:[%s6932_s5 + $0x360] ss:$16 sps:$4 sm:$0xff]  }
 0x289   :  { %v1487_v46 = vsel %vm1482_vm4, %v1484_v45, %v1486_v53  ;;  %v5139_v45 = vld [vmem:[%s6932_s5 + $0x344] ss:$16 sps:$4 sm:$0xff]   ;;  %v5146_v53 = vld [vmem:[%s6932_s5 + $0x368] ss:$16 sps:$4 sm:$0xff]  }
 0x28a   :  { %v6163_v54 = vmax.bf16 %v1487_v46, %v1467_v40  ;;  %v5128_v40 = vld [vmem:[%s6932_s5 + $0x308] ss:$16 sps:$4 sm:$0xff]   ;;  %v5151_v46 = vld [vmem:[%s6932_s5 + $0x384] ss:$16 sps:$4 sm:$0xff]  }
 0x28c   :  { %1501 = vrot.lane.b32.xlu1 %v1500_v55, %s5450_s1  ;;  %1493 = vrot.lane.b32.xlu0 %v6158_v48, %s5450_s1  ;;  %v1512_v49 = vrot.slane %v6163_v54, 2  ;;  %v1516_v57 = vrot.slane %v6163_v54, 4  ;;  %v1520_v58 = vrot.slane %v6163_v54, 6  ;;  %v5154_v55 = vld [vmem:[%s6932_s5 + $0x38c] ss:$16 sps:$4 sm:$0xff]  }
 0x290   :  { %1509 = vrot.lane.b32.xlu1 %v6163_v54, %s5450_s1  ;;  %1513 = vrot.lane.b32.xlu0 %v1512_v49, %s5450_s1  ;;  %v5149_v49 = vld [vmem:[%s6932_s5 + $0x380] ss:$16 sps:$4 sm:$0xff]  }
 0x294   :  { %1517 = vrot.lane.b32.xlu1 %v1516_v57, %s5450_s1  ;;  %1521 = vrot.lane.b32.xlu0 %v1520_v58, %s5450_s1  ;;  %v5152_v57 = vld [vmem:[%s6932_s5 + $0x388] ss:$16 sps:$4 sm:$0xff]   ;;  %v5157_v58 = vld [vmem:[%s6932_s5 + $0x3a4] ss:$16 sps:$4 sm:$0xff]  }
 0x2fa   :  { %v1498_v60 = vpop.permute.xlu0 %1497  ;;  %v1506_v6 = vpop.permute.xlu1 %1505 }
 0x2fb   :  { %v1530_v61 = vsel %vm1523_vm5, %v1495_v17, %v1498_v60  ;;  %v1538_v21 = vsel %vm1523_vm5, %v1503_v7, %v1506_v6  ;;  %v5160_v17 = vld [vmem:[%s6932_s5 + $0x3ac] ss:$16 sps:$4 sm:$0xff]   ;;  %v5155_v60 = vld [vmem:[%s6932_s5 + $0x3a0] ss:$16 sps:$4 sm:$0xff]  }
 0x2fc   :  { %3246 = vmatprep.mubr.bf16.mxu1 %v1530_v61  ;;  %3451 = vmatprep.mubr.bf16.mxu0 %v1530_v61  ;;  %v5158_v61 = vld [vmem:[%s6932_s5 + $0x3a8] ss:$16 sps:$4 sm:$0xff]   ;;  %v5161_v6 = vld [vmem:[%s6932_s5 + $0x3c0] ss:$16 sps:$4 sm:$0xff]   ;;  %v5172_v7 = vld [vmem:[%s6932_s5 + $0x3ec] ss:$16 sps:$4 sm:$0xff]  }
 0x2fe   :  { %v1494_v3 = vpop.permute.xlu0 %1493 }
 0x2ff   :  { %v1526_v5 = vsel %vm1523_vm5, %v1478_v29, %v1494_v3  ;;  %v5110_v29 = vld [vmem:[%s6932_s5 + $0x2a8] ss:$16 sps:$4 sm:$0xff]  }
 0x300   :  { %3247 = vmatmul.mubr.bf16.vlgmr.msra.gmra.mrb[48].mxu1 %v1526_v5  ;;  %3452 = vmatmul.mubr.bf16.vlgmr.msra.gmra.mrb[72].mxu0 %v1526_v5  ;;  %v5164_v3 = vld [vmem:[%s6932_s5 + $0x3c8] ss:$16 sps:$4 sm:$0xff]   ;;  %v5169_v5 = vld [vmem:[%s6932_s5 + $0x3e4] ss:$16 sps:$4 sm:$0xff]  }
 0x301   :  { %3256 = vmatpush1.bf16.msra.mxu1 %v5077_v20  ;;  %3461 = vmatpush1.bf16.msra.mxu0 %v5080_v63  ;;  %v5163_v20 = vld [vmem:[%s6932_s5 + $0x3c4] ss:$16 sps:$4 sm:$0xff]   ;;  %v5166_v63 = vld [vmem:[%s6932_s5 + $0x3cc] ss:$16 sps:$4 sm:$0xff]  }
 0x302   :  { %3287 = vmatprep.mubr.bf16.mxu1 %v1538_v21  ;;  %3492 = vmatprep.mubr.bf16.mxu0 %v1538_v21  ;;  %v5175_v21 = vld [vmem:[%s6932_s5 + $0x404] ss:$16 sps:$4 sm:$0xff]  }
 0x303   :  { %3257 = vmatprep.subr.bf16.mxu1 %v5085_v8  ;;  %3462 = vmatprep.subr.bf16.mxu0 %v5088_v38  ;;  %v5167_v8 = vld [vmem:[%s6932_s5 + $0x3e0] ss:$16 sps:$4 sm:$0xff]   ;;  %v5170_v38 = vld [vmem:[%s6932_s5 + $0x3e8] ss:$16 sps:$4 sm:$0xff]  }
 0x305   :  { %3258 = vmatpush1.bf16.msra.mxu1 %v5083_v9  ;;  %3463 = vmatpush1.bf16.msra.mxu0 %v5086_v11  ;;  %v5178_v9 = vld [vmem:[%s6932_s5 + $0x40c] ss:$16 sps:$4 sm:$0xff]   ;;  %v1502_v11 = vpop.permute.xlu1 %1501 }
 0x306   :  { %3259 = vmatprep.subr.bf16.mxu1 %v5091_v41  ;;  %3464 = vmatprep.subr.bf16.mxu0 %v5094_v12  ;;  %v1499_v41 = vrot.slane %v6158_v48, 3  ;;  %v1514_v12 = vpop.permute.xlu0 %1513 }
 0x309   :  { %3260 = vmatpush1.bf16.msra.mxu1 %v5089_v14  ;;  %3465 = vmatpush1.bf16.msra.mxu0 %v5092_v15  ;;  %v5173_v14 = vld [vmem:[%s6932_s5 + $0x400] ss:$16 sps:$4 sm:$0xff]   ;;  %v5176_v15 = vld [vmem:[%s6932_s5 + $0x408] ss:$16 sps:$4 sm:$0xff]  }
 0x30a   :  { %3261 = vmatprep.subr.bf16.mxu1 %v5097_v16  ;;  %3466 = vmatprep.subr.bf16.mxu0 %v5100_v18  ;;  %v1511_v16 = vrot.slane %v6163_v54, 1  ;;  %v1534_v18 = vsel %vm1523_vm5, %v1499_v41, %v1502_v11  ;;  %v5254_v11 = vld [vmem:[%s6932_s5 + $0x5a8] ss:$16 sps:$4 sm:$0xff]   ;;  %v5259_v41 = vld [vmem:[%s6932_s5 + $0x5c4] ss:$16 sps:$4 sm:$0xff]  }
 0x30d   :  { %3262 = vmatpush1.bf16.msra.mxu1 %v5095_v19  ;;  %3467 = vmatpush1.bf16.msra.mxu0 %v5098_v22  ;;  %v5181_v19 = vld [vmem:[%s6932_s5 + $0x424] ss:$16 sps:$4 sm:$0xff]   ;;  %v5184_v22 = vld [vmem:[%s6932_s5 + $0x42c] ss:$16 sps:$4 sm:$0xff]  }
 0x30e   :  { %3263 = vmatprep.subr.bf16.mxu1 %v5103_v56  ;;  %3468 = vmatprep.subr.bf16.mxu0 %v5106_v23  ;;  %v1546_v56 = vsel %vm1523_vm5, %v1511_v16, %v1514_v12  ;;  %v5179_v23 = vld [vmem:[%s6932_s5 + $0x420] ss:$16 sps:$4 sm:$0xff]   ;;  %v5262_v12 = vld [vmem:[%s6932_s5 + $0x5cc] ss:$16 sps:$4 sm:$0xff]   ;;  %v5265_v16 = vld [vmem:[%s6932_s5 + $0x5e4] ss:$16 sps:$4 sm:$0xff]  }
 0x311   :  { %3264 = vmatpush1.bf16.msra.mxu1 %v5101_v24  ;;  %3469 = vmatpush1.bf16.msra.mxu0 %v5104_v59  ;;  %v5182_v24 = vld [vmem:[%s6932_s5 + $0x428] ss:$16 sps:$4 sm:$0xff]   ;;  %v5187_v59 = vld [vmem:[%s6932_s5 + $0x444] ss:$16 sps:$4 sm:$0xff]  }
 0x312   :  { %3265 = vmatprep.subr.bf16.mxu1 %v5109_v25  ;;  %3470 = vmatprep.subr.bf16.mxu0 %v5112_v26  ;;  %v5190_v25 = vld [vmem:[%s6932_s5 + $0x44c] ss:$16 sps:$4 sm:$0xff]   ;;  %v5185_v26 = vld [vmem:[%s6932_s5 + $0x440] ss:$16 sps:$4 sm:$0xff]  }
 0x315   :  { %3266 = vmatpush1.bf16.msra.mxu1 %v5107_v27  ;;  %3471 = vmatpush1.bf16.msra.mxu0 %v5110_v29  ;;  %v5188_v27 = vld [vmem:[%s6932_s5 + $0x448] ss:$16 sps:$4 sm:$0xff]   ;;  %v5193_v29 = vld [vmem:[%s6932_s5 + $0x464] ss:$16 sps:$4 sm:$0xff]  }
 0x316   :  { %3267 = vmatprep.subr.bf16.mxu1 %v5115_v30  ;;  %3472 = vmatprep.subr.bf16.mxu0 %v5118_v32  ;;  %v5196_v30 = vld [vmem:[%s6932_s5 + $0x46c] ss:$16 sps:$4 sm:$0xff]   ;;  %v5191_v32 = vld [vmem:[%s6932_s5 + $0x460] ss:$16 sps:$4 sm:$0xff]  }
 0x319   :  { %3268 = vmatpush1.bf16.msra.mxu1 %v5113_v33  ;;  %3473 = vmatpush1.bf16.msra.mxu0 %v5116_v10  ;;  %v5194_v33 = vld [vmem:[%s6932_s5 + $0x468] ss:$16 sps:$4 sm:$0xff]   ;;  %v5199_v10 = vld [vmem:[%s6932_s5 + $0x484] ss:$16 sps:$4 sm:$0xff]  }
 0x31a   :  { %3269 = vmatprep.subr.bf16.mxu1 %v5121_v34  ;;  %3474 = vmatprep.subr.bf16.mxu0 %v5124_v50  ;;  %v5202_v34 = vld [vmem:[%s6932_s5 + $0x48c] ss:$16 sps:$4 sm:$0xff]   ;;  %v5197_v50 = vld [vmem:[%s6932_s5 + $0x480] ss:$16 sps:$4 sm:$0xff]  }
 0x31d   :  { %3270 = vmatpush1.bf16.msra.mxu1 %v5119_v13  ;;  %3475 = vmatpush1.bf16.msra.mxu0 %v5122_v35  ;;  %v5200_v13 = vld [vmem:[%s6932_s5 + $0x488] ss:$16 sps:$4 sm:$0xff]   ;;  %v5205_v35 = vld [vmem:[%s6932_s5 + $0x4a4] ss:$16 sps:$4 sm:$0xff]  }
 0x31e   :  { %3271 = vmatprep.subr.bf16.mxu1 %v5127_v36  ;;  %3476 = vmatprep.subr.bf16.mxu0 %v5130_v37  ;;  %v5208_v36 = vld [vmem:[%s6932_s5 + $0x4ac] ss:$16 sps:$4 sm:$0xff]   ;;  %v5203_v37 = vld [vmem:[%s6932_s5 + $0x4a0] ss:$16 sps:$4 sm:$0xff]  }
 0x321   :  { %3272 = vmatpush1.bf16.msra.mxu1 %v5125_v39  ;;  %3477 = vmatpush1.bf16.msra.mxu0 %v5128_v40  ;;  %v5206_v39 = vld [vmem:[%s6932_s5 + $0x4a8] ss:$16 sps:$4 sm:$0xff]   ;;  %v5211_v40 = vld [vmem:[%s6932_s5 + $0x4c4] ss:$16 sps:$4 sm:$0xff]  }
 0x322   :  { %3273 = vmatprep.subr.bf16.mxu1 %v5133_v42  ;;  %3478 = vmatprep.subr.bf16.mxu0 %v5136_v43  ;;  %v5214_v42 = vld [vmem:[%s6932_s5 + $0x4cc] ss:$16 sps:$4 sm:$0xff]   ;;  %v5209_v43 = vld [vmem:[%s6932_s5 + $0x4c0] ss:$16 sps:$4 sm:$0xff]  }
 0x325   :  { %3274 = vmatpush1.bf16.msra.mxu1 %v5131_v28  ;;  %3479 = vmatpush1.bf16.msra.mxu0 %v5134_v44  ;;  %v5212_v28 = vld [vmem:[%s6932_s5 + $0x4c8] ss:$16 sps:$4 sm:$0xff]   ;;  %v5217_v44 = vld [vmem:[%s6932_s5 + $0x4e4] ss:$16 sps:$4 sm:$0xff]  }
 0x326   :  { %3275 = vmatprep.subr.bf16.mxu1 %v5139_v45  ;;  %3480 = vmatprep.subr.bf16.mxu0 %v5142_v31  ;;  %v5220_v45 = vld [vmem:[%s6932_s5 + $0x4ec] ss:$16 sps:$4 sm:$0xff]   ;;  %v5215_v31 = vld [vmem:[%s6932_s5 + $0x4e0] ss:$16 sps:$4 sm:$0xff]  }
 0x329   :  { %3276 = vmatpush1.bf16.msra.mxu1 %v5137_v1  ;;  %3481 = vmatpush1.bf16.msra.mxu0 %v5140_v47  ;;  %v5218_v1 = vld [vmem:[%s6932_s5 + $0x4e8] ss:$16 sps:$4 sm:$0xff]   ;;  %v5223_v47 = vld [vmem:[%s6932_s5 + $0x504] ss:$16 sps:$4 sm:$0xff]  }
 0x32a   :  { %3277 = vmatprep.subr.bf16.mxu1 %v5145_v4  ;;  %3482 = vmatprep.subr.bf16.mxu0 %v5148_v51  ;;  %v5226_v4 = vld [vmem:[%s6932_s5 + $0x50c] ss:$16 sps:$4 sm:$0xff]   ;;  %v5221_v51 = vld [vmem:[%s6932_s5 + $0x500] ss:$16 sps:$4 sm:$0xff]  }
 0x32d   :  { %3278 = vmatpush1.bf16.msra.mxu1 %v5143_v52  ;;  %3483 = vmatpush1.bf16.msra.mxu0 %v5146_v53  ;;  %v5224_v52 = vld [vmem:[%s6932_s5 + $0x508] ss:$16 sps:$4 sm:$0xff]   ;;  %v5229_v53 = vld [vmem:[%s6932_s5 + $0x524] ss:$16 sps:$4 sm:$0xff]  }
 0x32e   :  { %3279 = vmatprep.subr.bf16.mxu1 %v5151_v46  ;;  %3484 = vmatprep.subr.bf16.mxu0 %v5154_v55  ;;  %v5232_v46 = vld [vmem:[%s6932_s5 + $0x52c] ss:$16 sps:$4 sm:$0xff]   ;;  %v5227_v55 = vld [vmem:[%s6932_s5 + $0x520] ss:$16 sps:$4 sm:$0xff]  }
 0x331   :  { %3280 = vmatpush1.bf16.msra.mxu1 %v5149_v49  ;;  %3485 = vmatpush1.bf16.msra.mxu0 %v5152_v57  ;;  %v5230_v49 = vld [vmem:[%s6932_s5 + $0x528] ss:$16 sps:$4 sm:$0xff]   ;;  %v5235_v57 = vld [vmem:[%s6932_s5 + $0x544] ss:$16 sps:$4 sm:$0xff]  }
 0x332   :  { %3281 = vmatprep.subr.bf16.mxu1 %v5157_v58  ;;  %3486 = vmatprep.subr.bf16.mxu0 %v5160_v17  ;;  %v5238_v58 = vld [vmem:[%s6932_s5 + $0x54c] ss:$16 sps:$4 sm:$0xff]   ;;  %v5233_v17 = vld [vmem:[%s6932_s5 + $0x540] ss:$16 sps:$4 sm:$0xff]  }
 0x335   :  { %3282 = vmatpush1.bf16.msra.mxu1 %v5155_v60  ;;  %3487 = vmatpush1.bf16.msra.mxu0 %v5158_v61  ;;  %v5236_v60 = vld [vmem:[%s6932_s5 + $0x548] ss:$16 sps:$4 sm:$0xff]   ;;  %v5241_v61 = vld [vmem:[%s6932_s5 + $0x564] ss:$16 sps:$4 sm:$0xff]  }
 0x336   :  { %3283 = vmatprep.subr.bf16.mxu1 %v5163_v20  ;;  %3488 = vmatprep.subr.bf16.mxu0 %v5166_v63  ;;  %v5244_v20 = vld [vmem:[%s6932_s5 + $0x56c] ss:$16 sps:$4 sm:$0xff]   ;;  %v5239_v63 = vld [vmem:[%s6932_s5 + $0x560] ss:$16 sps:$4 sm:$0xff]  }
 0x339   :  { %3284 = vmatpush1.bf16.msra.mxu1 %v5161_v6  ;;  %3489 = vmatpush1.bf16.msra.mxu0 %v5164_v3  ;;  %v5242_v6 = vld [vmem:[%s6932_s5 + $0x568] ss:$16 sps:$4 sm:$0xff]   ;;  %v5247_v3 = vld [vmem:[%s6932_s5 + $0x584] ss:$16 sps:$4 sm:$0xff]  }
 0x33a   :  { %3285 = vmatprep.subr.bf16.mxu1 %v5169_v5  ;;  %3490 = vmatprep.subr.bf16.mxu0 %v5172_v7  ;;  %v5250_v5 = vld [vmem:[%s6932_s5 + $0x58c] ss:$16 sps:$4 sm:$0xff]   ;;  %v5245_v7 = vld [vmem:[%s6932_s5 + $0x580] ss:$16 sps:$4 sm:$0xff]  }
 0x33d   :  { %3286 = vmatpush1.bf16.msra.mxu1 %v5167_v8  ;;  %3491 = vmatpush1.bf16.msra.mxu0 %v5170_v38  ;;  %v5248_v8 = vld [vmem:[%s6932_s5 + $0x588] ss:$16 sps:$4 sm:$0xff]   ;;  %v5253_v38 = vld [vmem:[%s6932_s5 + $0x5a4] ss:$16 sps:$4 sm:$0xff]  }
 0x33e   :  { %3296 = vmatprep.subr.bf16.mxu1 %v5175_v21  ;;  %3501 = vmatprep.subr.bf16.mxu0 %v5178_v9  ;;  %v5256_v21 = vld [vmem:[%s6932_s5 + $0x5ac] ss:$16 sps:$4 sm:$0xff]   ;;  %v5251_v9 = vld [vmem:[%s6932_s5 + $0x5a0] ss:$16 sps:$4 sm:$0xff]  }
 0x340   :  { %3288 = vmatmul.mubr.bf16.vlgmr.msra.gmra.mrb[48].mxu1 %v1534_v18  ;;  %3493 = vmatmul.mubr.bf16.vlgmr.msra.gmra.mrb[72].mxu0 %v1534_v18  ;;  %v5268_v18 = vld [vmem:[%s6932_s5 + $0x5ec] ss:$16 sps:$4 sm:$0xff]  }
 0x341   :  { %3297 = vmatpush1.bf16.msra.mxu1 %v5173_v14  ;;  %3328 = vmatprep.mubr.bf16.mxu1 %v1546_v56  ;;  %v5257_v14 = vld [vmem:[%s6932_s5 + $0x5c0] ss:$16 sps:$4 sm:$0xff]  }
 0x342   :  { %3502 = vmatpush1.bf16.msra.mxu0 %v5176_v15  ;;  %3533 = vmatprep.mubr.bf16.mxu0 %v1546_v56  ;;  %v5260_v15 = vld [vmem:[%s6932_s5 + $0x5c8] ss:$16 sps:$4 sm:$0xff]   ;;  %v5271_v56 = vld [vmem:[%s6932_s5 + $0x604] ss:$16 sps:$4 sm:$0xff]  }
 0x343   :  { %3298 = vmatprep.subr.bf16.mxu1 %v5181_v19  ;;  %3503 = vmatprep.subr.bf16.mxu0 %v5184_v22  ;;  %v5263_v19 = vld [vmem:[%s6932_s5 + $0x5e0] ss:$16 sps:$4 sm:$0xff]   ;;  %v5266_v22 = vld [vmem:[%s6932_s5 + $0x5e8] ss:$16 sps:$4 sm:$0xff]  }
 0x345   :  { %3299 = vmatpush1.bf16.msra.mxu1 %v5179_v23  ;;  %v5274_v23 = vld [vmem:[%s6932_s5 + $0x60c] ss:$16 sps:$4 sm:$0xff]  }
 0x346   :  { %3504 = vmatpush1.bf16.msra.mxu0 %v5182_v24  ;;  %3300 = vmatprep.subr.bf16.mxu1 %v5187_v59  ;;  %v1510_v24 = vpop.permute.xlu1 %1509  ;;  %v1507_v59 = vrot.slane %v6158_v48, 7  ;;  %v5277_v48 = vld [vmem:[%s6932_s5 + $0x624] ss:$16 sps:$4 sm:$0xff]  }
 0x347   :  { %3505 = vmatprep.subr.bf16.mxu0 %v5190_v25  ;;  %v5269_v25 = vld [vmem:[%s6932_s5 + $0x600] ss:$16 sps:$4 sm:$0xff]  }
 0x349   :  { %3301 = vmatpush1.bf16.msra.mxu1 %v5185_v26  ;;  %v1522_v26 = vpop.permute.xlu0 %1521 }
 0x34a   :  { %3506 = vmatpush1.bf16.msra.mxu0 %v5188_v27  ;;  %3302 = vmatprep.subr.bf16.mxu1 %v5193_v29  ;;  %v5272_v27 = vld [vmem:[%s6932_s5 + $0x608] ss:$16 sps:$4 sm:$0xff]   ;;  %v1542_v29 = vsel %vm1523_vm5, %v1507_v59, %v1510_v24  ;;  %v5355_v24 = vld [vmem:[%s6932_s5 + $0x7c4] ss:$16 sps:$4 sm:$0xff]   ;;  %v5358_v59 = vld [vmem:[%s6932_s5 + $0x7cc] ss:$16 sps:$4 sm:$0xff]  }
 0x34b   :  { %3507 = vmatprep.subr.bf16.mxu0 %v5196_v30  ;;  %v1519_v30 = vrot.slane %v6163_v54, 5 }
 0x34d   :  { %3303 = vmatpush1.bf16.msra.mxu1 %v5191_v32  ;;  %v5280_v32 = vld [vmem:[%s6932_s5 + $0x62c] ss:$16 sps:$4 sm:$0xff]  }
 0x34e   :  { %3508 = vmatpush1.bf16.msra.mxu0 %v5194_v33  ;;  %3304 = vmatprep.subr.bf16.mxu1 %v5199_v10  ;;  %v1554_v33 = vsel %vm1523_vm5, %v1519_v30, %v1522_v26  ;;  %v5275_v10 = vld [vmem:[%s6932_s5 + $0x620] ss:$16 sps:$4 sm:$0xff]   ;;  %v5356_v26 = vld [vmem:[%s6932_s5 + $0x7c8] ss:$16 sps:$4 sm:$0xff]  }
 0x34f   :  { %3509 = vmatprep.subr.bf16.mxu0 %v5202_v34  ;;  %v5278_v34 = vld [vmem:[%s6932_s5 + $0x628] ss:$16 sps:$4 sm:$0xff]   ;;  %v5359_v30 = vld [vmem:[%s6932_s5 + $0x7e0] ss:$16 sps:$4 sm:$0xff]  }
 0x351   :  { %3305 = vmatpush1.bf16.msra.mxu1 %v5197_v50  ;;  %v5283_v50 = vld [vmem:[%s6932_s5 + $0x644] ss:$16 sps:$4 sm:$0xff]  }
 0x352   :  { %3510 = vmatpush1.bf16.msra.mxu0 %v5200_v13  ;;  %3306 = vmatprep.subr.bf16.mxu1 %v5205_v35  ;;  %v5286_v13 = vld [vmem:[%s6932_s5 + $0x64c] ss:$16 sps:$4 sm:$0xff]   ;;  %v5281_v35 = vld [vmem:[%s6932_s5 + $0x640] ss:$16 sps:$4 sm:$0xff]  }
 0x353   :  { %3511 = vmatprep.subr.bf16.mxu0 %v5208_v36  ;;  %v5284_v36 = vld [vmem:[%s6932_s5 + $0x648] ss:$16 sps:$4 sm:$0xff]  }
 0x355   :  { %3307 = vmatpush1.bf16.msra.mxu1 %v5203_v37  ;;  %v5289_v37 = vld [vmem:[%s6932_s5 + $0x664] ss:$16 sps:$4 sm:$0xff]  }
 0x356   :  { %3512 = vmatpush1.bf16.msra.mxu0 %v5206_v39  ;;  %3308 = vmatprep.subr.bf16.mxu1 %v5211_v40  ;;  %v5292_v39 = vld [vmem:[%s6932_s5 + $0x66c] ss:$16 sps:$4 sm:$0xff]   ;;  %v5287_v40 = vld [vmem:[%s6932_s5 + $0x660] ss:$16 sps:$4 sm:$0xff]  }
 0x357   :  { %3513 = vmatprep.subr.bf16.mxu0 %v5214_v42  ;;  %v5290_v42 = vld [vmem:[%s6932_s5 + $0x668] ss:$16 sps:$4 sm:$0xff]  }
 0x359   :  { %3309 = vmatpush1.bf16.msra.mxu1 %v5209_v43  ;;  %v5295_v43 = vld [vmem:[%s6932_s5 + $0x684] ss:$16 sps:$4 sm:$0xff]  }
 0x35a   :  { %3514 = vmatpush1.bf16.msra.mxu0 %v5212_v28  ;;  %3310 = vmatprep.subr.bf16.mxu1 %v5217_v44  ;;  %v5298_v28 = vld [vmem:[%s6932_s5 + $0x68c] ss:$16 sps:$4 sm:$0xff]   ;;  %v5293_v44 = vld [vmem:[%s6932_s5 + $0x680] ss:$16 sps:$4 sm:$0xff]  }
 0x35b   :  { %3515 = vmatprep.subr.bf16.mxu0 %v5220_v45  ;;  %v5296_v45 = vld [vmem:[%s6932_s5 + $0x688] ss:$16 sps:$4 sm:$0xff]  }
 0x35d   :  { %3311 = vmatpush1.bf16.msra.mxu1 %v5215_v31  ;;  %v5301_v31 = vld [vmem:[%s6932_s5 + $0x6a4] ss:$16 sps:$4 sm:$0xff]  }
 0x35e   :  { %3516 = vmatpush1.bf16.msra.mxu0 %v5218_v1  ;;  %3312 = vmatprep.subr.bf16.mxu1 %v5223_v47  ;;  %v5304_v1 = vld [vmem:[%s6932_s5 + $0x6ac] ss:$16 sps:$4 sm:$0xff]   ;;  %v5299_v47 = vld [vmem:[%s6932_s5 + $0x6a0] ss:$16 sps:$4 sm:$0xff]  }
 0x35f   :  { %3517 = vmatprep.subr.bf16.mxu0 %v5226_v4  ;;  %v5302_v4 = vld [vmem:[%s6932_s5 + $0x6a8] ss:$16 sps:$4 sm:$0xff]  }
 0x361   :  { %3313 = vmatpush1.bf16.msra.mxu1 %v5221_v51  ;;  %v5307_v51 = vld [vmem:[%s6932_s5 + $0x6c4] ss:$16 sps:$4 sm:$0xff]  }
 0x362   :  { %3518 = vmatpush1.bf16.msra.mxu0 %v5224_v52  ;;  %3314 = vmatprep.subr.bf16.mxu1 %v5229_v53  ;;  %v5310_v52 = vld [vmem:[%s6932_s5 + $0x6cc] ss:$16 sps:$4 sm:$0xff]   ;;  %v5305_v53 = vld [vmem:[%s6932_s5 + $0x6c0] ss:$16 sps:$4 sm:$0xff]  }
 0x363   :  { %3519 = vmatprep.subr.bf16.mxu0 %v5232_v46  ;;  %v5308_v46 = vld [vmem:[%s6932_s5 + $0x6c8] ss:$16 sps:$4 sm:$0xff]  }
 0x365   :  { %3315 = vmatpush1.bf16.msra.mxu1 %v5227_v55  ;;  %v5313_v55 = vld [vmem:[%s6932_s5 + $0x6e4] ss:$16 sps:$4 sm:$0xff]  }
 0x366   :  { %3520 = vmatpush1.bf16.msra.mxu0 %v5230_v49  ;;  %3316 = vmatprep.subr.bf16.mxu1 %v5235_v57  ;;  %v5316_v49 = vld [vmem:[%s6932_s5 + $0x6ec] ss:$16 sps:$4 sm:$0xff]   ;;  %v5311_v57 = vld [vmem:[%s6932_s5 + $0x6e0] ss:$16 sps:$4 sm:$0xff]  }
 0x367   :  { %3521 = vmatprep.subr.bf16.mxu0 %v5238_v58  ;;  %v5314_v58 = vld [vmem:[%s6932_s5 + $0x6e8] ss:$16 sps:$4 sm:$0xff]  }
 0x369   :  { %3317 = vmatpush1.bf16.msra.mxu1 %v5233_v17  ;;  %v5319_v17 = vld [vmem:[%s6932_s5 + $0x704] ss:$16 sps:$4 sm:$0xff]  }
 0x36a   :  { %3522 = vmatpush1.bf16.msra.mxu0 %v5236_v60  ;;  %3318 = vmatprep.subr.bf16.mxu1 %v5241_v61  ;;  %v5322_v60 = vld [vmem:[%s6932_s5 + $0x70c] ss:$16 sps:$4 sm:$0xff]   ;;  %v5317_v61 = vld [vmem:[%s6932_s5 + $0x700] ss:$16 sps:$4 sm:$0xff]  }
 0x36b   :  { %3523 = vmatprep.subr.bf16.mxu0 %v5244_v20  ;;  %v5320_v20 = vld [vmem:[%s6932_s5 + $0x708] ss:$16 sps:$4 sm:$0xff]  }
 0x36d   :  { %3319 = vmatpush1.bf16.msra.mxu1 %v5239_v63  ;;  %v5325_v63 = vld [vmem:[%s6932_s5 + $0x724] ss:$16 sps:$4 sm:$0xff]  }
 0x36e   :  { %3524 = vmatpush1.bf16.msra.mxu0 %v5242_v6  ;;  %3320 = vmatprep.subr.bf16.mxu1 %v5247_v3  ;;  %v5328_v6 = vld [vmem:[%s6932_s5 + $0x72c] ss:$16 sps:$4 sm:$0xff]   ;;  %v5323_v3 = vld [vmem:[%s6932_s5 + $0x720] ss:$16 sps:$4 sm:$0xff]  }
 0x36f   :  { %3525 = vmatprep.subr.bf16.mxu0 %v5250_v5  ;;  %v5326_v5 = vld [vmem:[%s6932_s5 + $0x728] ss:$16 sps:$4 sm:$0xff]  }
 0x371   :  { %3321 = vmatpush1.bf16.msra.mxu1 %v5245_v7  ;;  %v5331_v7 = vld [vmem:[%s6932_s5 + $0x744] ss:$16 sps:$4 sm:$0xff]  }
 0x372   :  { %3526 = vmatpush1.bf16.msra.mxu0 %v5248_v8  ;;  %3322 = vmatprep.subr.bf16.mxu1 %v5253_v38  ;;  %v5334_v8 = vld [vmem:[%s6932_s5 + $0x74c] ss:$16 sps:$4 sm:$0xff]   ;;  %v5329_v38 = vld [vmem:[%s6932_s5 + $0x740] ss:$16 sps:$4 sm:$0xff]  }
 0x373   :  { %3527 = vmatprep.subr.bf16.mxu0 %v5256_v21  ;;  %v5332_v21 = vld [vmem:[%s6932_s5 + $0x748] ss:$16 sps:$4 sm:$0xff]  }
 0x375   :  { %3323 = vmatpush1.bf16.msra.mxu1 %v5251_v9  ;;  %v5337_v9 = vld [vmem:[%s6932_s5 + $0x764] ss:$16 sps:$4 sm:$0xff]  }
 0x376   :  { %3528 = vmatpush1.bf16.msra.mxu0 %v5254_v11  ;;  %3324 = vmatprep.subr.bf16.mxu1 %v5259_v41  ;;  %v5340_v11 = vld [vmem:[%s6932_s5 + $0x76c] ss:$16 sps:$4 sm:$0xff]   ;;  %v5335_v41 = vld [vmem:[%s6932_s5 + $0x760] ss:$16 sps:$4 sm:$0xff]  }
 0x377   :  { %3529 = vmatprep.subr.bf16.mxu0 %v5262_v12  ;;  %v5338_v12 = vld [vmem:[%s6932_s5 + $0x768] ss:$16 sps:$4 sm:$0xff]  }
 0x379   :  { %3325 = vmatpush1.bf16.msra.mxu1 %v5257_v14  ;;  %v5343_v14 = vld [vmem:[%s6932_s5 + $0x784] ss:$16 sps:$4 sm:$0xff]  }
 0x37a   :  { %3530 = vmatpush1.bf16.msra.mxu0 %v5260_v15  ;;  %3326 = vmatprep.subr.bf16.mxu1 %v5265_v16  ;;  %v5346_v15 = vld [vmem:[%s6932_s5 + $0x78c] ss:$16 sps:$4 sm:$0xff]   ;;  %v5341_v16 = vld [vmem:[%s6932_s5 + $0x780] ss:$16 sps:$4 sm:$0xff]  }
 0x37b   :  { %3531 = vmatprep.subr.bf16.mxu0 %v5268_v18  ;;  %v5344_v18 = vld [vmem:[%s6932_s5 + $0x788] ss:$16 sps:$4 sm:$0xff]  }
 0x37d   :  { %3327 = vmatpush1.bf16.msra.mxu1 %v5263_v19  ;;  %v5349_v19 = vld [vmem:[%s6932_s5 + $0x7a4] ss:$16 sps:$4 sm:$0xff]  }
 0x37e   :  { %3532 = vmatpush1.bf16.msra.mxu0 %v5266_v22  ;;  %3337 = vmatprep.subr.bf16.mxu1 %v5271_v56  ;;  %v5352_v22 = vld [vmem:[%s6932_s5 + $0x7ac] ss:$16 sps:$4 sm:$0xff]   ;;  %v5347_v56 = vld [vmem:[%s6932_s5 + $0x7a0] ss:$16 sps:$4 sm:$0xff]  }
 0x37f   :  { %3542 = vmatprep.subr.bf16.mxu0 %v5274_v23  ;;  %v5350_v23 = vld [vmem:[%s6932_s5 + $0x7a8] ss:$16 sps:$4 sm:$0xff]  }
 0x380   :  { %3329 = vmatmul.mubr.bf16.vlgmr.msra.gmra.mrb[48].mxu1 %v1542_v29 }
 0x381   :  { %3534 = vmatmul.mubr.bf16.vlgmr.msra.gmra.mrb[72].mxu0 %v1542_v29  ;;  %3338 = vmatpush1.bf16.msra.mxu1 %v5269_v25  ;;  %v5353_v25 = vld [vmem:[%s6932_s5 + $0x7c0] ss:$16 sps:$4 sm:$0xff]   ;;  %v5364_v29 = vld [vmem:[%s6932_s5 + $0x7ec] ss:$16 sps:$4 sm:$0xff]  }
 0x382   :  { %3369 = vmatprep.mubr.bf16.mxu1 %v1554_v33  ;;  %3543 = vmatpush1.bf16.msra.mxu0 %v5272_v27  ;;  %v5361_v27 = vld [vmem:[%s6932_s5 + $0x7e4] ss:$16 sps:$4 sm:$0xff]  }
 0x383   :  { %3574 = vmatprep.mubr.bf16.mxu0 %v1554_v33  ;;  %3339 = vmatprep.subr.bf16.mxu1 %v5277_v48  ;;  %v5362_v48 = vld [vmem:[%s6932_s5 + $0x7e8] ss:$16 sps:$4 sm:$0xff]   ;;  %v5370_v33 = vld [vmem:[%s6932_s5 + $0x80c] ss:$16 sps:$4 sm:$0xff]  }
 0x384   :  { %3544 = vmatprep.subr.bf16.mxu0 %v5280_v32  ;;  %v5367_v32 = vld [vmem:[%s6932_s5 + $0x804] ss:$16 sps:$4 sm:$0xff]  }
 0x385   :  { %3340 = vmatpush1.bf16.msra.mxu1 %v5275_v10  ;;  %v1518_v10 = vpop.permute.xlu1 %1517 }
 0x386   :  { %3545 = vmatpush1.bf16.msra.mxu0 %v5278_v34  ;;  %3341 = vmatprep.subr.bf16.mxu1 %v5283_v50  ;;  %v1515_v34 = vrot.slane %v6163_v54, 3  ;;  %v5365_v50 = vld [vmem:[%s6932_s5 + $0x800] ss:$16 sps:$4 sm:$0xff]  }
 0x387   :  { %3546 = vmatprep.subr.bf16.mxu0 %v5286_v13  ;;  %v5368_v13 = vld [vmem:[%s6932_s5 + $0x808] ss:$16 sps:$4 sm:$0xff]  }
 0x389   :  { %3342 = vmatpush1.bf16.msra.mxu1 %v5281_v35  ;;  %v5373_v35 = vld [vmem:[%s6932_s5 + $0x824] ss:$16 sps:$4 sm:$0xff]  }
 0x38a   :  { %3547 = vmatpush1.bf16.msra.mxu0 %v5284_v36  ;;  %3343 = vmatprep.subr.bf16.mxu1 %v5289_v37  ;;  %v1550_v36 = vsel %vm1523_vm5, %v1515_v34, %v1518_v10  ;;  %v5376_v37 = vld [vmem:[%s6932_s5 + $0x82c] ss:$16 sps:$4 sm:$0xff]  }
 0x38b   :  { %3548 = vmatprep.subr.bf16.mxu0 %v5292_v39  ;;  %v5371_v39 = vld [vmem:[%s6932_s5 + $0x820] ss:$16 sps:$4 sm:$0xff]  }
 0x38d   :  { %3344 = vmatpush1.bf16.msra.mxu1 %v5287_v40  ;;  %v5374_v40 = vld [vmem:[%s6932_s5 + $0x828] ss:$16 sps:$4 sm:$0xff]  }
 0x38e   :  { %3549 = vmatpush1.bf16.msra.mxu0 %v5290_v42  ;;  %3345 = vmatprep.subr.bf16.mxu1 %v5295_v43  ;;  %v5379_v42 = vld [vmem:[%s6932_s5 + $0x844] ss:$16 sps:$4 sm:$0xff]   ;;  %v5382_v43 = vld [vmem:[%s6932_s5 + $0x84c] ss:$16 sps:$4 sm:$0xff]  }
 0x38f   :  { %3550 = vmatprep.subr.bf16.mxu0 %v5298_v28  ;;  %v5377_v28 = vld [vmem:[%s6932_s5 + $0x840] ss:$16 sps:$4 sm:$0xff]  }
 0x391   :  { %3346 = vmatpush1.bf16.msra.mxu1 %v5293_v44  ;;  %v5380_v44 = vld [vmem:[%s6932_s5 + $0x848] ss:$16 sps:$4 sm:$0xff]  }
 0x392   :  { %3551 = vmatpush1.bf16.msra.mxu0 %v5296_v45  ;;  %3347 = vmatprep.subr.bf16.mxu1 %v5301_v31  ;;  %v5385_v45 = vld [vmem:[%s6932_s5 + $0x864] ss:$16 sps:$4 sm:$0xff]   ;;  %v5383_v31 = vld [vmem:[%s6932_s5 + $0x860] ss:$16 sps:$4 sm:$0xff]  }
 0x393   :  { %3552 = vmatprep.subr.bf16.mxu0 %v5304_v1  ;;  %v5386_v1 = vld [vmem:[%s6932_s5 + $0x868] ss:$16 sps:$4 sm:$0xff]  }
 0x395   :  { %3348 = vmatpush1.bf16.msra.mxu1 %v5299_v47  ;;  %v5389_v47 = vld [vmem:[%s6934_s7 + $0x40] sm:$0xff]  }
 0x396   :  { %3553 = vmatpush1.bf16.msra.mxu0 %v5302_v4  ;;  %3349 = vmatprep.subr.bf16.mxu1 %v5307_v51  ;;  %v5390_v4 = vld [vmem:[%s6934_s7 + $0xc0] sm:$0xff]  }
 0x397   :  { %3554 = vmatprep.subr.bf16.mxu0 %v5310_v52  ;;  %v5391_v51 = vld [vmem:[%s6934_s7] sm:$0xff]   ;;  %v1556_v52 = vrot.slane %v6163_v54, 7  ;;  %v5395_v54 = vld [vmem:[%s6934_s7 + $0x8] sm:$0xff]  }
 0x399   :  { %3350 = vmatpush1.bf16.msra.mxu1 %v5305_v53  ;;  %v5392_v53 = vld [vmem:[%s6934_s7 + $0x80] sm:$0xff]  }
 0x39a   :  { %3555 = vmatpush1.bf16.msra.mxu0 %v5308_v46  ;;  %3351 = vmatprep.subr.bf16.mxu1 %v5313_v55  ;;  %v5393_v46 = vld [vmem:[%s6934_s7 + $0x48] sm:$0xff]  }
 0x39b   :  { %3556 = vmatprep.subr.bf16.mxu0 %v5316_v49  ;;  %v5394_v55 = vld [vmem:[%s6934_s7 + $0xc8] sm:$0xff]  }
 0x39c   :  { %v5396_v49 = vld [vmem:[%s6934_s7 + $0x88] sm:$0xff]  }
 0x39d   :  { %3352 = vmatpush1.bf16.msra.mxu1 %v5311_v57  ;;  %v5397_v57 = vld [vmem:[%s6934_s7 + $0x50] sm:$0xff]  }
 0x39e   :  { %3557 = vmatpush1.bf16.msra.mxu0 %v5314_v58  ;;  %3353 = vmatprep.subr.bf16.mxu1 %v5319_v17  ;;  %v5398_v58 = vld [vmem:[%s6934_s7 + $0xd0] sm:$0xff]  }
 0x39f   :  { %3558 = vmatprep.subr.bf16.mxu0 %v5322_v60  ;;  %v5399_v17 = vld [vmem:[%s6934_s7 + $0x10] sm:$0xff]  }
 0x3a0   :  { %v5400_v60 = vld [vmem:[%s6934_s7 + $0x90] sm:$0xff]  }
 0x3a1   :  { %3354 = vmatpush1.bf16.msra.mxu1 %v5317_v61  ;;  %v5401_v61 = vld [vmem:[%s6934_s7 + $0x58] sm:$0xff]  }
 0x3a2   :  { %3559 = vmatpush1.bf16.msra.mxu0 %v5320_v20  ;;  %3355 = vmatprep.subr.bf16.mxu1 %v5325_v63  ;;  %v5402_v20 = vld [vmem:[%s6934_s7 + $0xd8] sm:$0xff]  }
 0x3a3   :  { %3560 = vmatprep.subr.bf16.mxu0 %v5328_v6  ;;  %v5403_v63 = vld [vmem:[%s6934_s7 + $0x18] sm:$0xff]  }
 0x3a4   :  { %v5404_v6 = vld [vmem:[%s6934_s7 + $0x98] sm:$0xff]  }
 0x3a5   :  { %3356 = vmatpush1.bf16.msra.mxu1 %v5323_v3  ;;  %v5405_v3 = vld [vmem:[%s6934_s7 + $0x60] sm:$0xff]  }
 0x3a6   :  { %3561 = vmatpush1.bf16.msra.mxu0 %v5326_v5  ;;  %3357 = vmatprep.subr.bf16.mxu1 %v5331_v7  ;;  %v5406_v5 = vld [vmem:[%s6934_s7 + $0xe0] sm:$0xff]  }
 0x3a7   :  { %3562 = vmatprep.subr.bf16.mxu0 %v5334_v8  ;;  %v5407_v7 = vld [vmem:[%s6934_s7 + $0x20] sm:$0xff]  }
 0x3a8   :  { %v5408_v8 = vld [vmem:[%s6934_s7 + $0xa0] sm:$0xff]  }
 0x3a9   :  { %3358 = vmatpush1.bf16.msra.mxu1 %v5329_v38  ;;  %v5409_v38 = vld [vmem:[%s6934_s7 + $0x68] sm:$0xff]  }
 0x3aa   :  { %3563 = vmatpush1.bf16.msra.mxu0 %v5332_v21  ;;  %3359 = vmatprep.subr.bf16.mxu1 %v5337_v9  ;;  %v5410_v21 = vld [vmem:[%s6934_s7 + $0xe8] sm:$0xff]  }
 0x3ab   :  { %3564 = vmatprep.subr.bf16.mxu0 %v5340_v11  ;;  %v5411_v9 = vld [vmem:[%s6934_s7 + $0x28] sm:$0xff]  }
 0x3ac   :  { %v5412_v11 = vld [vmem:[%s6934_s7 + $0xa8] sm:$0xff]  }
 0x3ad   :  { %3360 = vmatpush1.bf16.msra.mxu1 %v5335_v41  ;;  %v5413_v41 = vld [vmem:[%s6934_s7 + $0x70] sm:$0xff]  }
 0x3ae   :  { %3565 = vmatpush1.bf16.msra.mxu0 %v5338_v12  ;;  %3361 = vmatprep.subr.bf16.mxu1 %v5343_v14  ;;  %v5414_v12 = vld [vmem:[%s6934_s7 + $0xf0] sm:$0xff]  }
 0x3af   :  { %3566 = vmatprep.subr.bf16.mxu0 %v5346_v15  ;;  %v5415_v14 = vld [vmem:[%s6934_s7 + $0x30] sm:$0xff]  }
 0x3b0   :  { %v5416_v15 = vld [vmem:[%s6934_s7 + $0xb0] sm:$0xff]  }
 0x3b1   :  { %3362 = vmatpush1.bf16.msra.mxu1 %v5341_v16  ;;  %v5417_v16 = vld [vmem:[%s6934_s7 + $0x78] sm:$0xff]  }
 0x3b2   :  { %3567 = vmatpush1.bf16.msra.mxu0 %v5344_v18  ;;  %3363 = vmatprep.subr.bf16.mxu1 %v5349_v19  ;;  %v5418_v18 = vld [vmem:[%s6934_s7 + $0xf8] sm:$0xff]  }
 0x3b3   :  { %3568 = vmatprep.subr.bf16.mxu0 %v5352_v22  ;;  %v5419_v19 = vld [vmem:[%s6934_s7 + $0x38] sm:$0xff]  }
 0x3b4   :  { %v5420_v22 = vld [vmem:[%s6934_s7 + $0xb8] sm:$0xff]  }
 0x3b5   :  { %3364 = vmatpush1.bf16.msra.mxu1 %v5347_v56  ;;  %v1829_v56 = vld [vmem:[%s6933_s6] sm:$0xf] }
 0x3b6   :  { %3569 = vmatpush1.bf16.msra.mxu0 %v5350_v23  ;;  %3365 = vmatprep.subr.bf16.mxu1 %v5355_v24  ;;  %v1841_v23 = vsub.s32 2, %v6121_v2  ;;  %v1837_v24 = vsub.s32 1, %v6121_v2 }
 0x3b7   :  { %3570 = vmatprep.subr.bf16.mxu0 %v5358_v59  ;;  %v1845_v59 = vsub.s32 3, %v6121_v2 }
 0x3b9   :  { %3366 = vmatpush1.bf16.msra.mxu1 %v5353_v25  ;;  %v1834_v25 = vrot.slane %v1829_v56, %v6127_v0 }
 0x3ba   :  { %3571 = vmatpush1.bf16.msra.mxu0 %v5356_v26  ;;  %3367 = vmatprep.subr.bf16.mxu1 %v5361_v27  ;;  %v1842_v26 = vrot.slane %v1829_v56, %v1841_v23  ;;  %v1838_v27 = vrot.slane %v1829_v56, %v1837_v24 }
 0x3bb   :  { %3572 = vmatprep.subr.bf16.mxu0 %v5364_v29  ;;  %v1846_v29 = vrot.slane %v1829_v56, %v1845_v59 }
 0x3bd   :  { %3368 = vmatpush1.bf16.msra.mxu1 %v5359_v30 }
 0x3be   :  { %3573 = vmatpush1.bf16.msra.mxu0 %v5362_v48  ;;  %3378 = vmatprep.subr.bf16.mxu1 %v5367_v32 }
 0x3bf   :  { %3583 = vmatprep.subr.bf16.mxu0 %v5370_v33 }
 0x3c0   :  { %3370 = vmatmul.mubr.bf16.vlgmr.msra.gmra.mrb[48].mxu1 %v1550_v36 }
 0x3c1   :  { %3575 = vmatmul.mubr.bf16.vlgmr.msra.gmra.mrb[72].mxu0 %v1550_v36  ;;  %3379 = vmatpush1.bf16.msra.mxu1 %v5365_v50 }
 0x3c2   :  { %3584 = vmatpush1.bf16.msra.mxu0 %v5368_v13  ;;  %3380 = vmatprep.subr.bf16.mxu1 %v5373_v35 }
 0x3c3   :  { %3585 = vmatprep.subr.bf16.mxu0 %v5376_v37  ;;  %3410 = vmatprep.mubr.bf16.mxu1 %v5449_v62 }
 0x3c4   :  { %3615 = vmatprep.mubr.bf16.mxu0 %v5449_v62  ;;  %v5388_v62 = vld [vmem:[%s6932_s5 + $0x86c] ss:$16 sps:$4 sm:$0xff]  }
 0x3c5   :  { %3381 = vmatpush1.bf16.msra.mxu1 %v5371_v39 }
 0x3c6   :  { %3586 = vmatpush1.bf16.msra.mxu0 %v5374_v40  ;;  %3382 = vmatprep.subr.bf16.mxu1 %v5379_v42 }
 0x3c7   :  { %3587 = vmatprep.subr.bf16.mxu0 %v5382_v43 }
 0x3c9   :  { %3383 = vmatpush1.bf16.msra.mxu1 %v5377_v28 }
 0x3ca   :  { %3588 = vmatpush1.bf16.msra.mxu0 %v5380_v44  ;;  %3384 = vmatprep.subr.bf16.mxu1 %v5385_v45 }
 0x3cb   :  { %3589 = vmatprep.subr.bf16.mxu0 %v5388_v62 }
 0x3cd   :  { %3385 = vmatpush1.bf16.msra.mxu1 %v5383_v31 }
 0x3ce   :  { %3590 = vmatpush1.bf16.msra.mxu0 %v5386_v1  ;;  %4756 = vmatprep.subr.bf16.mxu1 %v5389_v47  ;;  %v4414_v1 = vld [vmem:[%s6935_s8] ss:$0 sm:$0xff]  ;;  %s5425_s8 = scalar_lea.vmem %s3989_s17, 32 }
 0x3cf   :  { %4778 = vmatprep.subr.bf16.mxu0 %v5390_v4  ;;  %p5426_p0 = scmp.ne.s32.totalorder %s3989_s17, %s5425_s8  ;;  %p5431_p2 = scmp.lt.s32.totalorder %s5425_s8, %s5425_s8 }
 0x3d0   :  { %4412 = vmatmul.mubr.msk.bf16.vlgmr.msra.gmra.mrb[48].mxu1 %vm1523_vm5, %v1556_v52 }
 0x3d1   :  { %4413 = vmatmul.mubr.msk.bf16.vlgmr.msra.gmra.mrb[72].mxu0 %vm1523_vm5, %v1556_v52  ;;  %4757 = vmatpush3.bf16.msra.mxu1 %v5391_v51  ;;  %p5432_p3 = por %p5431_p2, %p5430_p1 }
 0x3d2   :  { %4779 = vmatpush3.bf16.msra.mxu0 %v5392_v53  ;;  %4758 = vmatprep.subr.bf16.mxu1 %v5393_v46 }
 0x3d3   :  { %4780 = vmatprep.subr.bf16.mxu0 %v5394_v55  ;;  %p5433_p4 = pnand %p5432_p3, %p5426_p0 }
 0x3d5   :  { %4759 = vmatpush3.bf16.msra.mxu1 %v5395_v54 }
 0x3d6   :  { %4781 = vmatpush3.bf16.msra.mxu0 %v5396_v49  ;;  %4760 = vmatprep.subr.bf16.mxu1 %v5397_v57 }
 0x3d7   :  { %4782 = vmatprep.subr.bf16.mxu0 %v5398_v58 }
 0x3d9   :  { %4761 = vmatpush3.bf16.msra.mxu1 %v5399_v17 }
 0x3da   :  { %4783 = vmatpush3.bf16.msra.mxu0 %v5400_v60  ;;  %4762 = vmatprep.subr.bf16.mxu1 %v5401_v61 }
 0x3db   :  { %4784 = vmatprep.subr.bf16.mxu0 %v5402_v20 }
 0x3dd   :  { %4763 = vmatpush3.bf16.msra.mxu1 %v5403_v63 }
 0x3de   :  { %4785 = vmatpush3.bf16.msra.mxu0 %v5404_v6  ;;  %4764 = vmatprep.subr.bf16.mxu1 %v5405_v3 }
 0x3df   :  { %4786 = vmatprep.subr.bf16.mxu0 %v5406_v5 }
 0x3e1   :  { %4765 = vmatpush3.bf16.msra.mxu1 %v5407_v7 }
 0x3e2   :  { %4787 = vmatpush3.bf16.msra.mxu0 %v5408_v8  ;;  %4766 = vmatprep.subr.bf16.mxu1 %v5409_v38 }
 0x3e3   :  { %4788 = vmatprep.subr.bf16.mxu0 %v5410_v21 }
 0x3e5   :  { %4767 = vmatpush3.bf16.msra.mxu1 %v5411_v9 }
 0x3e6   :  { %4789 = vmatpush3.bf16.msra.mxu0 %v5412_v11  ;;  %4768 = vmatprep.subr.bf16.mxu1 %v5413_v41 }
 0x3e7   :  { %4790 = vmatprep.subr.bf16.mxu0 %v5414_v12 }
 0x3e9   :  { %4769 = vmatpush3.bf16.msra.mxu1 %v5415_v14 }
 0x3ea   :  { %4791 = vmatpush3.bf16.msra.mxu0 %v5416_v15  ;;  %4770 = vmatprep.subr.bf16.mxu1 %v5417_v16 }
 0x3eb   :  { %4792 = vmatprep.subr.bf16.mxu0 %v5418_v18 }
 0x3ed   :  { %4771 = vmatpush3.bf16.msra.mxu1 %v5419_v19 }
 0x3ee   :  { %4793 = vmatpush3.bf16.msra.mxu0 %v5420_v22 }
 0x4a3   :  { %v3412_v30 = vpop.f32.mrb[48].mxu1 }
 0x4a4   :  { %v4800_v48 = vadd.f32 %v3412_v30, %v1834_v25  ;;  %v3617_v32 = vpop.f32.mrb[72].mxu0  ;;  %v3414_v33 = vpop.f32.mrb[49].mxu1 }
 0x4a5   :  { %v4802_v10 = vadd.f32 %v3617_v32, %v1842_v26  ;;  %v4801_v34 = vadd.f32 %v3414_v33, %v1838_v27  ;;  %v3619_v50 = vpop.f32.mrb[73].mxu0  ;;  %v3416_v13 = vpop.f32.mrb[50].mxu1 }
 0x4a6   :  { %v3624_v35 = vmax.f32 %v4800_v48, 0.0  ;;  %v4803_v36 = vadd.f32 %v3619_v50, %v1846_v29  ;;  %v3621_v37 = vpop.f32.mrb[74].mxu0  ;;  %v3417_v39 = vpop.f32.mrb[51].mxu1 }
 0x4a7   :  { %v3626_v40 = vmax.f32 %v4802_v10, 0.0  ;;  %v3625_v42 = vmax.f32 %v4801_v34, 0.0  ;;  %v3622_v2 = vpop.f32.mrb[75].mxu0 }
 0x4a8   :  { %v3627_v43 = vmax.f32 %v4803_v36, 0.0  ;;  %v3628_v28 = vpack.c.bf16 %v3624_v35, %v3624_v35 }
 0x4a9   :  { %v3629_v0 = vpack.c.bf16 %v3625_v42, %v3625_v42  ;;  %v3630_v45 = vpack.c.bf16 %v3626_v40, %v3626_v40 }
 0x4aa   :  { %v3631_v44 = vpack.c.bf16 %v3627_v43, %v3627_v43 }
 0x4ab   :  { %3927 = vmatprep.mubr.bf16.mxu1 %v3629_v0 }
 0x4ac   :  { %3967 = vmatprep.mubr.bf16.mxu0 %v3631_v44  ;;  %3928 = vmatmul.mubr.bf16.vlgmr.msra.gmra.mrb[52].mxu1 %v3628_v28 }
 0x4ad   :  { %3968 = vmatmul.mubr.bf16.vlgmr.msra.gmra.mrb[76].mxu0 %v3630_v45 }
 0x57f   :  { %v4772_v62 = vpop.f32.mrb[52].mxu1 }
 0x580   :  { %v4794_v31 = vpop.f32.mrb[76].mxu0  ;;  %v4773_v47 = vpop.f32.mrb[53].mxu1 }
 0x581   :  { %v4774_v4 = vadd.f32 %v4773_v47, %v4772_v62  ;;  %v4795_v51 = vpop.f32.mrb[77].mxu0  ;;  %v4775_v52 = vpop.f32.mrb[54].mxu1 }
 0x582   :  { %v4796_v53 = vadd.f32 %v4795_v51, %v4794_v31  ;;  %v4797_v46 = vpop.f32.mrb[78].mxu0  ;;  %v4776_v55 = vpop.f32.mrb[55].mxu1 }
 0x583   :  { %v3930_v54 = vadd.f32 %v4774_v4, %v4414_v1  ;;  %v4798_v49 = vpop.f32.mrb[79].mxu0 }
 0x585   :  { %v3970_v57 = vadd.f32 %v4796_v53, %v3930_v54 }
 0x587   :  { %v4447_v58 = vmul.f32 -1.442695, %v3970_v57 }
 0x589   :  { %5421 = vpow2.f32 %v4447_v58 }
 0x593   :  { %v5422_v17 = vpop.eup %5421 }
 0x594   :  { %v3978_v60 = vadd.f32 1.0, %v5422_v17 }
 0x596   :  { %5423 = vrcp.f32 %v3978_v60 }
 0x5a0   :  { %v5424_v61 = vpop.eup %5423 }
 0x5a1   :  { %3981 = vst [vmem:[#allocation3] sm:$0x3] %v5424_v61 }
 0x5a2   :  { %5436 = shalt.err (!%p5433_p4)
}
 0x5a3   :  { %s5437_s20 = scalar_lea.hbm %s6936_s9, 32 }
 0x5a4   :  { %p5438_p5 = scmp.ne.s32.totalorder %s6936_s9, %s5437_s20  ;;  %p5441_p6 = scmp.lt.u32.totalorder %s5437_s20, %s6936_s9 }
 0x5a6   :  { %p5443_p7 = pnand %p5441_p6, %p5438_p5 }
 0x5a8   :  { %5446 = shalt.err (!%p5443_p7)
}
 0x5a9   :  { %3991 = dma.vmem_to_hbm [thread:$0]  %s3989_s17, 32, %s6936_s9, [#allocation4]  }
 0x5aa   :  { %5447 = dma.done.wait [#allocation4], 32  }
 0x5ab   :  { %5448 = vsyncadd [#allocation4], 4294967264 }
 0x5ac   :  { %3995 = vsyncpa [#allocation4], 1 }

</bundles_post_ra>
